<compile_context>
chip_gen: v6e
topology: v6e:2x2x1
jax: 0.10.0
libtpu: 0.0.40
codegen_flags: <defaults>
</compile_context>

<pallas_src>
import functools

import jax
import jax.numpy as jnp
import numpy as np
from jax.experimental import pallas as pl
from jax.experimental.pallas import tpu as pltpu


def _fusion_kernel(num_heads, head_dim, eps, with_attn, *refs):
    (xt_ref, k_ref, v_ref, wq_ref, bq_ref, wz_ref,
     gamma_ref, beta_ref, mean_ref, var_ref) = refs[:10]
    z_ref = refs[10]
    attn_ref = refs[11] if with_attn else None

    xt = xt_ref[0]                       # (C, tq)    bf16, this-branch query tile
    k = k_ref[0]                         # (inter, N) bf16, hoisted K (full keys)
    v = v_ref[0]                         # (inter, N) bf16, hoisted V
    wz = wz_ref[...]                     # (inter, C) f32

    # Fused all-heads Q projection for this tile (1/sqrt(head_dim) folded into Wq/bq).
    q = jnp.dot(wq_ref[...], xt, preferred_element_type=jnp.float32) + bq_ref[...]
    q = q.astype(jnp.bfloat16)           # (inter, tq)

    y = None                             # (C, tq) f32 accumulator (lane-dense in tq)
    for h in range(num_heads):           # num_heads is small -> static unroll
        lo = h * head_dim
        qh = q[lo:lo + head_dim, :]      # (hd, tq)  sublane slice
        kh = k[lo:lo + head_dim, :]      # (hd, N)   sublane slice
        vh = v[lo:lo + head_dim, :]      # (hd, N)   sublane slice

        # scores = q_h^T @ k_h -> (tq, N), lane-dense in N
        s = jax.lax.dot_general(qh, kh, (((0,), (0,)), ((), ())),
                                preferred_element_type=jnp.float32)
        m = jnp.max(s, axis=-1, keepdims=True)
        e = jnp.exp(s - m)
        attn = e * (1.0 / jnp.sum(e, axis=-1, keepdims=True))   # exact normalise
        if attn_ref is not None:
            attn_ref[0, h] = attn.astype(attn_ref.dtype)

        # out_h^T = v_h @ attn^T -> (hd, tq)
        o_t = jax.lax.dot_general(vh, attn.astype(jnp.bfloat16),
                                  (((1,), (1,)), ((), ())),
                                  preferred_element_type=jnp.float32)
        # y += Wz_h^T @ out_h^T -> (C, tq), kept in f32 (no scratch, no bf16 round-trip)
        y_h = jax.lax.dot_general(wz[lo:lo + head_dim, :], o_t,
                                  (((0,), (0,)), ((), ())),
                                  preferred_element_type=jnp.float32)
        y = y_h if y is None else y + y_h

    # Eval-mode BatchNorm2d, applied once on the lane-dense (C, tq) result.
    inv_std = jax.lax.rsqrt(var_ref[...] + eps)                  # (C, 1)
    z_ref[0] = (gamma_ref[...] * (y - mean_ref[...]) * inv_std
                + beta_ref[...]).astype(z_ref.dtype)


def _vmem_capacity_bytes():
    try:
        return int(pltpu.get_tpu_info().vmem_capacity_bytes)
    except Exception:
        return 64 * 1024 * 1024          # conservative: v7x per-core VMEM


def _estimate_vmem_bytes(tq, N, C, inter, heads, attn_bytes, z_bytes, with_attn):
    """Rough per-step VMEM footprint: double-buffered pipelined blocks + live temps."""
    db = 2
    b = db * C * tq * 2                          # x_this tile (bf16)
    b += db * 2 * inter * N * 2                  # K and V blocks (bf16)
    b += db * C * tq * z_bytes                   # z output block
    if with_attn:
        b += db * heads * tq * N * attn_bytes    # attention output block (dominant)
    b += db * (inter * C * 2 + inter * 4 + inter * C * 4 + 4 * C * 4)  # weights/BN
    b += 3 * tq * N * 4 + inter * tq * 4 + C * tq * 4                  # live f32 temps
    return b


def _pick_q_tile(N, est_fn, budget):
    # Layout-legal tiles: tq == N (full dim) or a multiple of 128 dividing N.
    cands = sorted({N} | {t for t in (1024, 512, 256, 128) if t < N and N % t == 0},
                   reverse=True)
    for tq in cands:
        if est_fn(tq) <= budget:
            return tq                    # largest tile that fits the VMEM budget
    return cands[-1]
    # TODO(synk): if N is both huge and not a multiple of 128, pad the key axis
    # with -inf-masked columns instead of falling back to tq == N.


def slice_feature_fusion(x_this, x_other, params, num_heads,
                         q_tile=None, return_attention=True,
                         attn_dtype=jnp.bfloat16, out_dtype=jnp.float32):
    """x_this, x_other: (B, C, H, W) NCHW (PyTorch convention).

    Returns (z, attention_weights) like the PyTorch module. Pass
    return_attention=False for the fast path that skips the O(N^2) writeback.
    """
    B, C, H, W = x_this.shape
    N = H * W
    inter = params["wq"].shape[0]
    assert inter % num_heads == 0
    head_dim = inter // num_heads
    scale = 1.0 / float(head_dim) ** 0.5
    eps = 1e-5

    # Channel-major (native NCHW) activations -- no transposes anywhere.
    xt = x_this.reshape(B, C, N).astype(jnp.bfloat16)
    xo = x_other.reshape(B, C, N)

    # Hoisted K/V projections: one (inter, C) @ (C, N) matmul per batch, done ONCE
    # (previously the kernel redid these for every query tile).
    k_all = (jnp.einsum("oc,bcn->bon", params["wk"], xo)
             + params["bk"][None, :, None]).astype(jnp.bfloat16)
    v_all = (jnp.einsum("oc,bcn->bon", params["wv"], xo)
             + params["bv"][None, :, None]).astype(jnp.bfloat16)

    # Q projection stays in-kernel (per-tile, not redundant); fold the attention
    # scale into its weight/bias. Wz stays f32 for an accurate epilogue.
    wq = (params["wq"] * scale).astype(jnp.bfloat16)                # (inter, C)
    bq = (params["bq"] * scale).reshape(inter, 1).astype(jnp.float32)
    wz = params["wz"].T.astype(jnp.float32)                        # (inter, C)
    gamma = params["gamma"].reshape(C, 1).astype(jnp.float32)
    beta = params["beta"].reshape(C, 1).astype(jnp.float32)
    mean = params["mean"].reshape(C, 1).astype(jnp.float32)
    var = params["var"].reshape(C, 1).astype(jnp.float32)

    attn_bytes = jnp.dtype(attn_dtype).itemsize
    z_bytes = jnp.dtype(out_dtype).itemsize
    cap = _vmem_capacity_bytes()
    budget = int(cap * 0.7)
    est_fn = lambda t: _estimate_vmem_bytes(t, N, C, inter, num_heads,
                                            attn_bytes, z_bytes, return_attention)
    tq = q_tile or _pick_q_tile(N, est_fn, budget)
    if N % tq != 0 or (tq != N and tq % 128 != 0):
        tq = N
    n_q = N // tq
    vmem_limit = int(min(cap - (4 << 20), max(budget, int(est_fn(tq) * 1.25))))

    kernel = functools.partial(_fusion_kernel, num_heads, head_dim, eps,
                               return_attention)

    def const(shape):
        return pl.BlockSpec(shape, lambda b, qi: tuple(0 for _ in shape))

    in_specs = [
        pl.BlockSpec((1, C, tq), lambda b, qi: (b, 0, qi)),        # x_this tile
        pl.BlockSpec((1, inter, N), lambda b, qi: (b, 0, 0)),      # K (full, per batch)
        pl.BlockSpec((1, inter, N), lambda b, qi: (b, 0, 0)),      # V (full, per batch)
        const((inter, C)), const((inter, 1)),                      # Wq (scaled), bq
        const((inter, C)),                                         # Wz^T (f32)
        const((C, 1)), const((C, 1)), const((C, 1)), const((C, 1)),  # BN params
    ]
    out_specs = [pl.BlockSpec((1, C, tq), lambda b, qi: (b, 0, qi))]
    out_shape = [jax.ShapeDtypeStruct((B, C, N), out_dtype)]
    if return_attention:
        out_specs.append(
            pl.BlockSpec((1, num_heads, tq, N), lambda b, qi: (b, 0, qi, 0)))
        out_shape.append(
            jax.ShapeDtypeStruct((B, num_heads, N, N), attn_dtype))

    flops = 4 * B * N * inter * (C + N)
    transc = B * num_heads * N * N
    bytes_acc = (B * C * N * 2 + 2 * B * inter * N * 2 + B * C * N * z_bytes
                 + (B * num_heads * N * N * attn_bytes if return_attention else 0)
                 + 2 * inter * C * 4 + 4 * C * 4)

    outs = pl.pallas_call(
        kernel,
        out_shape=tuple(out_shape),
        grid_spec=pltpu.PrefetchScalarGridSpec(
            num_scalar_prefetch=0,
            grid=(B, n_q),
            in_specs=in_specs,
            out_specs=out_specs,
        ),
        compiler_params=pltpu.CompilerParams(
            dimension_semantics=("parallel", "parallel"),
            vmem_limit_bytes=vmem_limit),
        cost_estimate=pl.CostEstimate(flops=int(flops),
                                      transcendentals=int(transc),
                                      bytes_accessed=int(bytes_acc)),
    )(xt, k_all, v_all, wq, bq, wz, gamma, beta, mean, var)

    z = outs[0].reshape(B, C, H, W)        # (B, C, N) is already NCHW-ordered
    attn = outs[1] if return_attention else None
    return z, attn


def init_params(key, in_channels, inter_channels):
    """Deterministic synthetic parameters matching the module's shapes."""
    ks = jax.random.split(key, 11)
    s_in = 1.0 / np.sqrt(in_channels)
    s_it = 1.0 / np.sqrt(inter_channels)
    return {
        "wq": jax.random.normal(ks[0], (inter_channels, in_channels), jnp.float32) * s_in,
        "bq": jax.random.normal(ks[1], (inter_channels,), jnp.float32) * s_in,
        "wk": jax.random.normal(ks[2], (inter_channels, in_channels), jnp.float32) * s_in,
        "bk": jax.random.normal(ks[3], (inter_channels,), jnp.float32) * s_in,
        "wv": jax.random.normal(ks[4], (inter_channels, in_channels), jnp.float32) * s_in,
        "bv": jax.random.normal(ks[5], (inter_channels,), jnp.float32) * s_in,
        "wz": jax.random.normal(ks[6], (in_channels, inter_channels), jnp.float32) * s_it,
        # NOTE: the module __init__ zeroes gamma/beta (which would make z == 0 and
        # leave the W_z + BN path untested). We use nonzero eval-mode BN params so
        # that path is actually exercised; forward semantics hold for any values.
        "gamma": 1.0 + 0.1 * jax.random.normal(ks[7], (in_channels,), jnp.float32),
        "beta": 0.1 * jax.random.normal(ks[8], (in_channels,), jnp.float32),
        "mean": 0.1 * jax.random.normal(ks[9], (in_channels,), jnp.float32),
        "var": 1.0 + 0.5 * jax.random.uniform(ks[10], (in_channels,), jnp.float32),
    }


def reference_forward(x_this, x_other, p, num_heads):
    """Pure-JAX f32 reference mirroring the PyTorch forward (BatchNorm in eval mode)."""
    B, C, H, W = x_this.shape
    N = H * W
    inter = p["wq"].shape[0]
    head_dim = inter // num_heads

    def conv1x1(x, w, b=None):
        y = jnp.einsum("bchw,oc->bohw", x, w)
        return y if b is None else y + b[None, :, None, None]

    q = conv1x1(x_this, p["wq"], p["bq"])
    k = conv1x1(x_other, p["wk"], p["bk"])
    v = conv1x1(x_other, p["wv"], p["bv"])

    def to_heads(t):
        return jnp.transpose(t.reshape(B, num_heads, head_dim, N), (0, 1, 3, 2))

    q, k, v = to_heads(q), to_heads(k), to_heads(v)
    scores = jnp.einsum("bhnd,bhmd->bhnm", q, k) / head_dim ** 0.5
    attn = jax.nn.softmax(scores, axis=-1)
    out = jnp.einsum("bhnm,bhmd->bhnd", attn, v)
    out = jnp.transpose(out, (0, 1, 3, 2)).reshape(B, inter, H, W)
    zc = conv1x1(out, p["wz"])
    inv = 1.0 / jnp.sqrt(p["var"] + 1e-5)
    z = (p["gamma"][None, :, None, None] * (zc - p["mean"][None, :, None, None])
         * inv[None, :, None, None] + p["beta"][None, :, None, None])
    return z, attn


if __name__ == "__main__":
    B, C, H, W = 2, 32, 8, 8
    num_heads = 4
    inter = C // 2                      # default inter_channels = in_channels // 2

    key = jax.random.PRNGKey(0)
    k_x, k_y, k_p = jax.random.split(key, 3)
    x_this = jax.random.normal(k_x, (B, C, H, W), jnp.float32)
    x_other = jax.random.normal(k_y, (B, C, H, W), jnp.float32)
    params = init_params(k_p, C, inter)

    z, attn = slice_feature_fusion(x_this, x_other, params, num_heads)
    jax.block_until_ready((z, attn))

    z_ref, attn_ref = reference_forward(x_this, x_other, params, num_heads)
    assert z.shape == (B, C, H, W)
    assert attn.shape == (B, num_heads, H * W, H * W)
    # bf16 MXU inputs + bf16-stored attention => loosened tolerances vs f32 ref.
    np.testing.assert_allclose(np.asarray(attn).astype(np.float32),
                               np.asarray(attn_ref), atol=3e-2, rtol=0)
    np.testing.assert_allclose(np.asarray(z).astype(np.float32),
                               np.asarray(z_ref), atol=5e-2, rtol=5e-2)

    # Fast path: skip the O(N^2) attention writeback entirely.
    z_fast, attn_none = slice_feature_fusion(x_this, x_other, params, num_heads,
                                             return_attention=False)
    jax.block_until_ready(z_fast)
    assert attn_none is None
    np.testing.assert_allclose(np.asarray(z_fast).astype(np.float32),
                               np.asarray(z_ref), atol=5e-2, rtol=5e-2)

    print("KERNEL_OK")
</pallas_src>

<mosaic_0001>
module attributes {stable_mosaic.version = 11 : i64} {
  func.func @_fusion_kernel(%arg0: i32, %arg1: i32, %arg2: memref<1x32x64xbf16, #tpu.memory_space<vmem>>, %arg3: memref<1x16x64xbf16, #tpu.memory_space<vmem>>, %arg4: memref<1x16x64xbf16, #tpu.memory_space<vmem>>, %arg5: memref<16x32xbf16, #tpu.memory_space<vmem>>, %arg6: memref<16x1xf32, #tpu.memory_space<vmem>>, %arg7: memref<16x32xf32, #tpu.memory_space<vmem>>, %arg8: memref<32x1xf32, #tpu.memory_space<vmem>>, %arg9: memref<32x1xf32, #tpu.memory_space<vmem>>, %arg10: memref<32x1xf32, #tpu.memory_space<vmem>>, %arg11: memref<32x1xf32, #tpu.memory_space<vmem>>, %arg12: memref<1x32x64xf32, #tpu.memory_space<vmem>>, %arg13: memref<1x4x64x64xbf16, #tpu.memory_space<vmem>>) attributes {dimension_semantics = [#tpu.dimension_semantics<parallel>, #tpu.dimension_semantics<parallel>], iteration_bounds = array<i64: 2, 1>, scalar_prefetch = 0 : i64, scratch_operands = 0 : i64, tpu.core_type = #tpu.core_type<tc>, window_params = [{transform_indices = @transform_0, window_bounds = array<i64: 1, 32, 64>}, {transform_indices = @transform_1, window_bounds = array<i64: 1, 16, 64>}, {transform_indices = @transform_2, window_bounds = array<i64: 1, 16, 64>}, {pipeline_mode = #tpu.pipeline_mode<synchronous>, transform_indices = @transform_3, window_bounds = array<i64: 16, 32>}, {pipeline_mode = #tpu.pipeline_mode<synchronous>, transform_indices = @transform_4, window_bounds = array<i64: 16, 1>}, {pipeline_mode = #tpu.pipeline_mode<synchronous>, transform_indices = @transform_5, window_bounds = array<i64: 16, 32>}, {pipeline_mode = #tpu.pipeline_mode<synchronous>, transform_indices = @transform_6, window_bounds = array<i64: 32, 1>}, {pipeline_mode = #tpu.pipeline_mode<synchronous>, transform_indices = @transform_7, window_bounds = array<i64: 32, 1>}, {pipeline_mode = #tpu.pipeline_mode<synchronous>, transform_indices = @transform_8, window_bounds = array<i64: 32, 1>}, {pipeline_mode = #tpu.pipeline_mode<synchronous>, transform_indices = @transform_9, window_bounds = array<i64: 32, 1>}, {transform_indices = @transform_10, window_bounds = array<i64: 1, 32, 64>}, {transform_indices = @transform_11, window_bounds = array<i64: 1, 4, 64, 64>}]} {
    %c0 = arith.constant 0 : index
    %c0_0 = arith.constant 0 : index
    %c0_1 = arith.constant 0 : index
    %0 = vector.load %arg2[%c0, %c0_0, %c0_1] : memref<1x32x64xbf16, #tpu.memory_space<vmem>>, vector<1x32x64xbf16>
    %1 = vector.shape_cast %0 : vector<1x32x64xbf16> to vector<32x64xbf16>
    %c0_2 = arith.constant 0 : index
    %c0_3 = arith.constant 0 : index
    %c0_4 = arith.constant 0 : index
    %2 = vector.load %arg3[%c0_2, %c0_3, %c0_4] : memref<1x16x64xbf16, #tpu.memory_space<vmem>>, vector<1x16x64xbf16>
    %3 = vector.shape_cast %2 : vector<1x16x64xbf16> to vector<16x64xbf16>
    %c0_5 = arith.constant 0 : index
    %c0_6 = arith.constant 0 : index
    %c0_7 = arith.constant 0 : index
    %4 = vector.load %arg4[%c0_5, %c0_6, %c0_7] : memref<1x16x64xbf16, #tpu.memory_space<vmem>>, vector<1x16x64xbf16>
    %5 = vector.shape_cast %4 : vector<1x16x64xbf16> to vector<16x64xbf16>
    %c0_8 = arith.constant 0 : index
    %c0_9 = arith.constant 0 : index
    %6 = vector.load %arg7[%c0_8, %c0_9] : memref<16x32xf32, #tpu.memory_space<vmem>>, vector<16x32xf32>
    %c0_10 = arith.constant 0 : index
    %c0_11 = arith.constant 0 : index
    %7 = vector.load %arg5[%c0_10, %c0_11] : memref<16x32xbf16, #tpu.memory_space<vmem>>, vector<16x32xbf16>
    %cst = arith.constant dense<0.000000e+00> : vector<16x64xf32>
    %8 = tpu.matmul %7, %1, %cst {dimension_numbers = #tpu.dot_dimension_numbers<[1], [0], [0], [1], [0, 0, 1, 1], [], []>} : vector<16x32xbf16>, vector<32x64xbf16>, vector<16x64xf32> -> vector<16x64xf32>
    %c0_12 = arith.constant 0 : index
    %c0_13 = arith.constant 0 : index
    %9 = vector.load %arg6[%c0_12, %c0_13] : memref<16x1xf32, #tpu.memory_space<vmem>>, vector<16x1xf32>
    %10 = vector.broadcast %9 : vector<16x1xf32> to vector<16x64xf32>
    %11 = arith.addf %8, %10 : vector<16x64xf32>
    %12 = arith.truncf %11 : vector<16x64xf32> to vector<16x64xbf16>
    %13 = vector.extract_strided_slice %12 {offsets = [0, 0], sizes = [4, 64], strides = [1, 1]} : vector<16x64xbf16> to vector<4x64xbf16>
    %14 = vector.extract_strided_slice %3 {offsets = [0, 0], sizes = [4, 64], strides = [1, 1]} : vector<16x64xbf16> to vector<4x64xbf16>
    %15 = vector.extract_strided_slice %5 {offsets = [0, 0], sizes = [4, 64], strides = [1, 1]} : vector<16x64xbf16> to vector<4x64xbf16>
    %cst_14 = arith.constant dense<0.000000e+00> : vector<64x64xf32>
    %16 = tpu.matmul %13, %14, %cst_14 {dimension_numbers = #tpu.dot_dimension_numbers<[0], [0], [1], [1], [0, 1, 1, 1], [], []>} : vector<4x64xbf16>, vector<4x64xbf16>, vector<64x64xf32> -> vector<64x64xf32>
    %cst_15 = arith.constant dense<0xFF800000> : vector<64xf32>
    %17 = vector.multi_reduction <maximumf>, %16, %cst_15 [1] : vector<64x64xf32> to vector<64xf32>
    %18 = vector.shape_cast %17 : vector<64xf32> to vector<64x1xf32>
    %19 = vector.broadcast %18 : vector<64x1xf32> to vector<64x64xf32>
    %20 = arith.subf %16, %19 : vector<64x64xf32>
    %21 = math.exp %20 : vector<64x64xf32>
    %cst_16 = arith.constant dense<0.000000e+00> : vector<64xf32>
    %22 = vector.multi_reduction <add>, %21, %cst_16 [1] : vector<64x64xf32> to vector<64xf32>
    %23 = vector.shape_cast %22 : vector<64xf32> to vector<64x1xf32>
    %cst_17 = arith.constant 1.000000e+00 : f32
    %24 = vector.broadcast %cst_17 : f32 to vector<64x1xf32>
    %25 = arith.divf %24, %23 : vector<64x1xf32>
    %26 = vector.broadcast %25 : vector<64x1xf32> to vector<64x64xf32>
    %27 = arith.mulf %21, %26 : vector<64x64xf32>
    %28 = arith.truncf %27 : vector<64x64xf32> to vector<64x64xbf16>
    %c0_18 = arith.constant 0 : index
    %c0_19 = arith.constant 0 : index
    %c0_20 = arith.constant 0 : index
    %c0_21 = arith.constant 0 : index
    %29 = vector.load %arg13[%c0_18, %c0_19, %c0_20, %c0_21] : memref<1x4x64x64xbf16, #tpu.memory_space<vmem>>, vector<1x1x64x64xbf16>
    %30 = vector.shape_cast %29 : vector<1x1x64x64xbf16> to vector<64x64xbf16>
    %31 = vector.shape_cast %28 : vector<64x64xbf16> to vector<1x1x64x64xbf16>
    tpu.vector_store %arg13[%c0_18, %c0_19, %c0_20, %c0_21], %31 {strides = array<i32>} : memref<1x4x64x64xbf16, #tpu.memory_space<vmem>>, vector<1x1x64x64xbf16>,
    %32 = arith.truncf %27 : vector<64x64xf32> to vector<64x64xbf16>
    %cst_22 = arith.constant dense<0.000000e+00> : vector<4x64xf32>
    %33 = tpu.matmul %15, %32, %cst_22 {dimension_numbers = #tpu.dot_dimension_numbers<[1], [1], [0], [0], [0, 0, 1, 0], [], []>} : vector<4x64xbf16>, vector<64x64xbf16>, vector<4x64xf32> -> vector<4x64xf32>
    %34 = vector.extract_strided_slice %6 {offsets = [0, 0], sizes = [4, 32], strides = [1, 1]} : vector<16x32xf32> to vector<4x32xf32>
    %cst_23 = arith.constant dense<0.000000e+00> : vector<32x64xf32>
    %35 = tpu.matmul %34, %33, %cst_23 {dimension_numbers = #tpu.dot_dimension_numbers<[0], [0], [1], [1], [0, 1, 1, 1], [], []>} : vector<4x32xf32>, vector<4x64xf32>, vector<32x64xf32> -> vector<32x64xf32>
    %36 = vector.extract_strided_slice %12 {offsets = [4, 0], sizes = [4, 64], strides = [1, 1]} : vector<16x64xbf16> to vector<4x64xbf16>
    %37 = vector.extract_strided_slice %3 {offsets = [4, 0], sizes = [4, 64], strides = [1, 1]} : vector<16x64xbf16> to vector<4x64xbf16>
    %38 = vector.extract_strided_slice %5 {offsets = [4, 0], sizes = [4, 64], strides = [1, 1]} : vector<16x64xbf16> to vector<4x64xbf16>
    %cst_24 = arith.constant dense<0.000000e+00> : vector<64x64xf32>
    %39 = tpu.matmul %36, %37, %cst_24 {dimension_numbers = #tpu.dot_dimension_numbers<[0], [0], [1], [1], [0, 1, 1, 1], [], []>} : vector<4x64xbf16>, vector<4x64xbf16>, vector<64x64xf32> -> vector<64x64xf32>
    %cst_25 = arith.constant dense<0xFF800000> : vector<64xf32>
    %40 = vector.multi_reduction <maximumf>, %39, %cst_25 [1] : vector<64x64xf32> to vector<64xf32>
    %41 = vector.shape_cast %40 : vector<64xf32> to vector<64x1xf32>
    %42 = vector.broadcast %41 : vector<64x1xf32> to vector<64x64xf32>
    %43 = arith.subf %39, %42 : vector<64x64xf32>
    %44 = math.exp %43 : vector<64x64xf32>
    %cst_26 = arith.constant dense<0.000000e+00> : vector<64xf32>
    %45 = vector.multi_reduction <add>, %44, %cst_26 [1] : vector<64x64xf32> to vector<64xf32>
    %46 = vector.shape_cast %45 : vector<64xf32> to vector<64x1xf32>
    %cst_27 = arith.constant 1.000000e+00 : f32
    %47 = vector.broadcast %cst_27 : f32 to vector<64x1xf32>
    %48 = arith.divf %47, %46 : vector<64x1xf32>
    %49 = vector.broadcast %48 : vector<64x1xf32> to vector<64x64xf32>
    %50 = arith.mulf %44, %49 : vector<64x64xf32>
    %51 = arith.truncf %50 : vector<64x64xf32> to vector<64x64xbf16>
    %c0_28 = arith.constant 0 : index
    %c1 = arith.constant 1 : index
    %c0_29 = arith.constant 0 : index
    %c0_30 = arith.constant 0 : index
    %52 = vector.load %arg13[%c0_28, %c1, %c0_29, %c0_30] : memref<1x4x64x64xbf16, #tpu.memory_space<vmem>>, vector<1x1x64x64xbf16>
    %53 = vector.shape_cast %52 : vector<1x1x64x64xbf16> to vector<64x64xbf16>
    %54 = vector.shape_cast %51 : vector<64x64xbf16> to vector<1x1x64x64xbf16>
    tpu.vector_store %arg13[%c0_28, %c1, %c0_29, %c0_30], %54 {strides = array<i32>} : memref<1x4x64x64xbf16, #tpu.memory_space<vmem>>, vector<1x1x64x64xbf16>,
    %55 = arith.truncf %50 : vector<64x64xf32> to vector<64x64xbf16>
    %cst_31 = arith.constant dense<0.000000e+00> : vector<4x64xf32>
    %56 = tpu.matmul %38, %55, %cst_31 {dimension_numbers = #tpu.dot_dimension_numbers<[1], [1], [0], [0], [0, 0, 1, 0], [], []>} : vector<4x64xbf16>, vector<64x64xbf16>, vector<4x64xf32> -> vector<4x64xf32>
    %57 = vector.extract_strided_slice %6 {offsets = [4, 0], sizes = [4, 32], strides = [1, 1]} : vector<16x32xf32> to vector<4x32xf32>
    %cst_32 = arith.constant dense<0.000000e+00> : vector<32x64xf32>
    %58 = tpu.matmul %57, %56, %cst_32 {dimension_numbers = #tpu.dot_dimension_numbers<[0], [0], [1], [1], [0, 1, 1, 1], [], []>} : vector<4x32xf32>, vector<4x64xf32>, vector<32x64xf32> -> vector<32x64xf32>
    %59 = arith.addf %35, %58 : vector<32x64xf32>
    %60 = vector.extract_strided_slice %12 {offsets = [8, 0], sizes = [4, 64], strides = [1, 1]} : vector<16x64xbf16> to vector<4x64xbf16>
    %61 = vector.extract_strided_slice %3 {offsets = [8, 0], sizes = [4, 64], strides = [1, 1]} : vector<16x64xbf16> to vector<4x64xbf16>
    %62 = vector.extract_strided_slice %5 {offsets = [8, 0], sizes = [4, 64], strides = [1, 1]} : vector<16x64xbf16> to vector<4x64xbf16>
    %cst_33 = arith.constant dense<0.000000e+00> : vector<64x64xf32>
    %63 = tpu.matmul %60, %61, %cst_33 {dimension_numbers = #tpu.dot_dimension_numbers<[0], [0], [1], [1], [0, 1, 1, 1], [], []>} : vector<4x64xbf16>, vector<4x64xbf16>, vector<64x64xf32> -> vector<64x64xf32>
    %cst_34 = arith.constant dense<0xFF800000> : vector<64xf32>
    %64 = vector.multi_reduction <maximumf>, %63, %cst_34 [1] : vector<64x64xf32> to vector<64xf32>
    %65 = vector.shape_cast %64 : vector<64xf32> to vector<64x1xf32>
    %66 = vector.broadcast %65 : vector<64x1xf32> to vector<64x64xf32>
    %67 = arith.subf %63, %66 : vector<64x64xf32>
    %68 = math.exp %67 : vector<64x64xf32>
    %cst_35 = arith.constant dense<0.000000e+00> : vector<64xf32>
    %69 = vector.multi_reduction <add>, %68, %cst_35 [1] : vector<64x64xf32> to vector<64xf32>
    %70 = vector.shape_cast %69 : vector<64xf32> to vector<64x1xf32>
    %cst_36 = arith.constant 1.000000e+00 : f32
    %71 = vector.broadcast %cst_36 : f32 to vector<64x1xf32>
    %72 = arith.divf %71, %70 : vector<64x1xf32>
    %73 = vector.broadcast %72 : vector<64x1xf32> to vector<64x64xf32>
    %74 = arith.mulf %68, %73 : vector<64x64xf32>
    %75 = arith.truncf %74 : vector<64x64xf32> to vector<64x64xbf16>
    %c0_37 = arith.constant 0 : index
    %c2 = arith.constant 2 : index
    %c0_38 = arith.constant 0 : index
    %c0_39 = arith.constant 0 : index
    %76 = vector.load %arg13[%c0_37, %c2, %c0_38, %c0_39] : memref<1x4x64x64xbf16, #tpu.memory_space<vmem>>, vector<1x1x64x64xbf16>
    %77 = vector.shape_cast %76 : vector<1x1x64x64xbf16> to vector<64x64xbf16>
    %78 = vector.shape_cast %75 : vector<64x64xbf16> to vector<1x1x64x64xbf16>
    tpu.vector_store %arg13[%c0_37, %c2, %c0_38, %c0_39], %78 {strides = array<i32>} : memref<1x4x64x64xbf16, #tpu.memory_space<vmem>>, vector<1x1x64x64xbf16>,
    %79 = arith.truncf %74 : vector<64x64xf32> to vector<64x64xbf16>
    %cst_40 = arith.constant dense<0.000000e+00> : vector<4x64xf32>
    %80 = tpu.matmul %62, %79, %cst_40 {dimension_numbers = #tpu.dot_dimension_numbers<[1], [1], [0], [0], [0, 0, 1, 0], [], []>} : vector<4x64xbf16>, vector<64x64xbf16>, vector<4x64xf32> -> vector<4x64xf32>
    %81 = vector.extract_strided_slice %6 {offsets = [8, 0], sizes = [4, 32], strides = [1, 1]} : vector<16x32xf32> to vector<4x32xf32>
    %cst_41 = arith.constant dense<0.000000e+00> : vector<32x64xf32>
    %82 = tpu.matmul %81, %80, %cst_41 {dimension_numbers = #tpu.dot_dimension_numbers<[0], [0], [1], [1], [0, 1, 1, 1], [], []>} : vector<4x32xf32>, vector<4x64xf32>, vector<32x64xf32> -> vector<32x64xf32>
    %83 = arith.addf %59, %82 : vector<32x64xf32>
    %84 = vector.extract_strided_slice %12 {offsets = [12, 0], sizes = [4, 64], strides = [1, 1]} : vector<16x64xbf16> to vector<4x64xbf16>
    %85 = vector.extract_strided_slice %3 {offsets = [12, 0], sizes = [4, 64], strides = [1, 1]} : vector<16x64xbf16> to vector<4x64xbf16>
    %86 = vector.extract_strided_slice %5 {offsets = [12, 0], sizes = [4, 64], strides = [1, 1]} : vector<16x64xbf16> to vector<4x64xbf16>
    %cst_42 = arith.constant dense<0.000000e+00> : vector<64x64xf32>
    %87 = tpu.matmul %84, %85, %cst_42 {dimension_numbers = #tpu.dot_dimension_numbers<[0], [0], [1], [1], [0, 1, 1, 1], [], []>} : vector<4x64xbf16>, vector<4x64xbf16>, vector<64x64xf32> -> vector<64x64xf32>
    %cst_43 = arith.constant dense<0xFF800000> : vector<64xf32>
    %88 = vector.multi_reduction <maximumf>, %87, %cst_43 [1] : vector<64x64xf32> to vector<64xf32>
    %89 = vector.shape_cast %88 : vector<64xf32> to vector<64x1xf32>
    %90 = vector.broadcast %89 : vector<64x1xf32> to vector<64x64xf32>
    %91 = arith.subf %87, %90 : vector<64x64xf32>
    %92 = math.exp %91 : vector<64x64xf32>
    %cst_44 = arith.constant dense<0.000000e+00> : vector<64xf32>
    %93 = vector.multi_reduction <add>, %92, %cst_44 [1] : vector<64x64xf32> to vector<64xf32>
    %94 = vector.shape_cast %93 : vector<64xf32> to vector<64x1xf32>
    %cst_45 = arith.constant 1.000000e+00 : f32
    %95 = vector.broadcast %cst_45 : f32 to vector<64x1xf32>
    %96 = arith.divf %95, %94 : vector<64x1xf32>
    %97 = vector.broadcast %96 : vector<64x1xf32> to vector<64x64xf32>
    %98 = arith.mulf %92, %97 : vector<64x64xf32>
    %99 = arith.truncf %98 : vector<64x64xf32> to vector<64x64xbf16>
    %c0_46 = arith.constant 0 : index
    %c3 = arith.constant 3 : index
    %c0_47 = arith.constant 0 : index
    %c0_48 = arith.constant 0 : index
    %100 = vector.load %arg13[%c0_46, %c3, %c0_47, %c0_48] : memref<1x4x64x64xbf16, #tpu.memory_space<vmem>>, vector<1x1x64x64xbf16>
    %101 = vector.shape_cast %100 : vector<1x1x64x64xbf16> to vector<64x64xbf16>
    %102 = vector.shape_cast %99 : vector<64x64xbf16> to vector<1x1x64x64xbf16>
    tpu.vector_store %arg13[%c0_46, %c3, %c0_47, %c0_48], %102 {strides = array<i32>} : memref<1x4x64x64xbf16, #tpu.memory_space<vmem>>, vector<1x1x64x64xbf16>,
    %103 = arith.truncf %98 : vector<64x64xf32> to vector<64x64xbf16>
    %cst_49 = arith.constant dense<0.000000e+00> : vector<4x64xf32>
    %104 = tpu.matmul %86, %103, %cst_49 {dimension_numbers = #tpu.dot_dimension_numbers<[1], [1], [0], [0], [0, 0, 1, 0], [], []>} : vector<4x64xbf16>, vector<64x64xbf16>, vector<4x64xf32> -> vector<4x64xf32>
    %105 = vector.extract_strided_slice %6 {offsets = [12, 0], sizes = [4, 32], strides = [1, 1]} : vector<16x32xf32> to vector<4x32xf32>
    %cst_50 = arith.constant dense<0.000000e+00> : vector<32x64xf32>
    %106 = tpu.matmul %105, %104, %cst_50 {dimension_numbers = #tpu.dot_dimension_numbers<[0], [0], [1], [1], [0, 1, 1, 1], [], []>} : vector<4x32xf32>, vector<4x64xf32>, vector<32x64xf32> -> vector<32x64xf32>
    %107 = arith.addf %83, %106 : vector<32x64xf32>
    %c0_51 = arith.constant 0 : index
    %c0_52 = arith.constant 0 : index
    %108 = vector.load %arg11[%c0_51, %c0_52] : memref<32x1xf32, #tpu.memory_space<vmem>>, vector<32x1xf32>
    %cst_53 = arith.constant 9.99999974E-6 : f32
    %109 = vector.broadcast %cst_53 : f32 to vector<32x1xf32>
    %110 = arith.addf %108, %109 : vector<32x1xf32>
    %111 = math.rsqrt %110 : vector<32x1xf32>
    %c0_54 = arith.constant 0 : index
    %c0_55 = arith.constant 0 : index
    %112 = vector.load %arg8[%c0_54, %c0_55] : memref<32x1xf32, #tpu.memory_space<vmem>>, vector<32x1xf32>
    %c0_56 = arith.constant 0 : index
    %c0_57 = arith.constant 0 : index
    %113 = vector.load %arg10[%c0_56, %c0_57] : memref<32x1xf32, #tpu.memory_space<vmem>>, vector<32x1xf32>
    %114 = vector.broadcast %113 : vector<32x1xf32> to vector<32x64xf32>
    %115 = arith.subf %107, %114 : vector<32x64xf32>
    %116 = vector.broadcast %112 : vector<32x1xf32> to vector<32x64xf32>
    %117 = arith.mulf %116, %115 : vector<32x64xf32>
    %118 = vector.broadcast %111 : vector<32x1xf32> to vector<32x64xf32>
    %119 = arith.mulf %117, %118 : vector<32x64xf32>
    %c0_58 = arith.constant 0 : index
    %c0_59 = arith.constant 0 : index
    %120 = vector.load %arg9[%c0_58, %c0_59] : memref<32x1xf32, #tpu.memory_space<vmem>>, vector<32x1xf32>
    %121 = vector.broadcast %120 : vector<32x1xf32> to vector<32x64xf32>
    %122 = arith.addf %119, %121 : vector<32x64xf32>
    %c0_60 = arith.constant 0 : index
    %c0_61 = arith.constant 0 : index
    %c0_62 = arith.constant 0 : index
    %123 = vector.load %arg12[%c0_60, %c0_61, %c0_62] : memref<1x32x64xf32, #tpu.memory_space<vmem>>, vector<1x32x64xf32>
    %124 = vector.shape_cast %123 : vector<1x32x64xf32> to vector<32x64xf32>
    %125 = vector.shape_cast %122 : vector<32x64xf32> to vector<1x32x64xf32>
    tpu.vector_store %arg12[%c0_60, %c0_61, %c0_62], %125 {strides = array<i32>} : memref<1x32x64xf32, #tpu.memory_space<vmem>>, vector<1x32x64xf32>,
    return
  }
  func.func @transform_0(%arg0: i32, %arg1: i32) -> (i32, i32, i32) {
    %c0_i32 = arith.constant 0 : i32
    %c0_i32_0 = arith.constant 0 : i32
    return %arg0, %c0_i32, %arg1 : i32, i32, i32
  }
  func.func @transform_1(%arg0: i32, %arg1: i32) -> (i32, i32, i32) {
    %c0_i32 = arith.constant 0 : i32
    %c0_i32_0 = arith.constant 0 : i32
    %c0_i32_1 = arith.constant 0 : i32
    return %arg0, %c0_i32, %c0_i32_0 : i32, i32, i32
  }
  func.func @transform_2(%arg0: i32, %arg1: i32) -> (i32, i32, i32) {
    %c0_i32 = arith.constant 0 : i32
    %c0_i32_0 = arith.constant 0 : i32
    %c0_i32_1 = arith.constant 0 : i32
    return %arg0, %c0_i32, %c0_i32_0 : i32, i32, i32
  }
  func.func @transform_3(%arg0: i32, %arg1: i32) -> (i32, i32) {
    %c0_i32 = arith.constant 0 : i32
    %c0_i32_0 = arith.constant 0 : i32
    %c0_i32_1 = arith.constant 0 : i32
    return %c0_i32, %c0_i32_0 : i32, i32
  }
  func.func @transform_4(%arg0: i32, %arg1: i32) -> (i32, i32) {
    %c0_i32 = arith.constant 0 : i32
    %c0_i32_0 = arith.constant 0 : i32
    %c0_i32_1 = arith.constant 0 : i32
    return %c0_i32, %c0_i32_0 : i32, i32
  }
  func.func @transform_5(%arg0: i32, %arg1: i32) -> (i32, i32) {
    %c0_i32 = arith.constant 0 : i32
    %c0_i32_0 = arith.constant 0 : i32
    %c0_i32_1 = arith.constant 0 : i32
    return %c0_i32, %c0_i32_0 : i32, i32
  }
  func.func @transform_6(%arg0: i32, %arg1: i32) -> (i32, i32) {
    %c0_i32 = arith.constant 0 : i32
    %c0_i32_0 = arith.constant 0 : i32
    %c0_i32_1 = arith.constant 0 : i32
    return %c0_i32, %c0_i32_0 : i32, i32
  }
  func.func @transform_7(%arg0: i32, %arg1: i32) -> (i32, i32) {
    %c0_i32 = arith.constant 0 : i32
    %c0_i32_0 = arith.constant 0 : i32
    %c0_i32_1 = arith.constant 0 : i32
    return %c0_i32, %c0_i32_0 : i32, i32
  }
  func.func @transform_8(%arg0: i32, %arg1: i32) -> (i32, i32) {
    %c0_i32 = arith.constant 0 : i32
    %c0_i32_0 = arith.constant 0 : i32
    %c0_i32_1 = arith.constant 0 : i32
    return %c0_i32, %c0_i32_0 : i32, i32
  }
  func.func @transform_9(%arg0: i32, %arg1: i32) -> (i32, i32) {
    %c0_i32 = arith.constant 0 : i32
    %c0_i32_0 = arith.constant 0 : i32
    %c0_i32_1 = arith.constant 0 : i32
    return %c0_i32, %c0_i32_0 : i32, i32
  }
  func.func @transform_10(%arg0: i32, %arg1: i32) -> (i32, i32, i32) {
    %c0_i32 = arith.constant 0 : i32
    %c0_i32_0 = arith.constant 0 : i32
    return %arg0, %c0_i32, %arg1 : i32, i32, i32
  }
  func.func @transform_11(%arg0: i32, %arg1: i32) -> (i32, i32, i32, i32) {
    %c0_i32 = arith.constant 0 : i32
    %c0_i32_0 = arith.constant 0 : i32
    %c0_i32_1 = arith.constant 0 : i32
    return %arg0, %c0_i32, %arg1, %c0_i32_0 : i32, i32, i32, i32
  }
}

</mosaic_0001>

<bundles_post_ra>
// kernel: tpu_custom_call.1
= control target key start
LH: loop header
LB: loop body
LE: loop exit
PB: predicated region body
PF: predicated region fallthrough
CT: control target
= control target key end

     0   :  { %s3954_s0 = inlined_call_operand.vmem [shape: bf16[2,32,64], index: 0, kind: input, shape index: {}]   ;;  %s3955_s1 = inlined_call_operand.vmem [shape: bf16[2,16,64], index: 1, kind: input, shape index: {}]   ;;  %s3956_s2 = inlined_call_operand.vmem [shape: bf16[2,16,64], index: 2, kind: input, shape index: {}]   ;;  %s3957_s3 = inlined_call_operand.vmem [shape: bf16[16,32], index: 3, kind: input, shape index: {}]   ;;  %s3958_s4 = inlined_call_operand.vmem [shape: f32[16,1], index: 4, kind: input, shape index: {}]   ;;  %s3959_s5 = inlined_call_operand.vmem [shape: f32[16,32], index: 5, kind: input, shape index: {}]   ;;  %s3960_s6 = inlined_call_operand.vmem [shape: f32[32,1], index: 6, kind: input, shape index: {}]   ;;  %s3961_s7 = inlined_call_operand.vmem [shape: f32[32,1], index: 7, kind: input, shape index: {}]   ;;  %s3962_s8 = inlined_call_operand.vmem [shape: f32[32,1], index: 8, kind: input, shape index: {}]   ;;  %s3963_s9 = inlined_call_operand.vmem [shape: f32[32,1], index: 9, kind: input, shape index: {}]   ;;  %s3964_s10 = inlined_call_operand.hbm [shape: f32[2,32,64], index: 10, kind: output, shape index: {0}]   ;;  %s3965_s11 = inlined_call_operand.hbm [shape: bf16[2,4,64,64], index: 11, kind: output, shape index: {1}]  }
   0x1   :  { %3967 = sst [smem:[#allocation9_spill]] %s3954_s0 }
   0x2   :  { %3968 = sst [smem:[#allocation10_spill]] %s3955_s1 }
   0x3   :  { %17 = vsyncpa [#allocation3], 0 }
   0x4   :  { %19 = vsyncpa [#allocation3 + $0x1], 0 }
   0x5   :  { %20 = vsyncpa [#allocation5], 0 }
   0x6   :  { %22 = vsyncpa [#allocation5 + $0x1], 0  ;;  %s3318_s17 = smov 0   ;;  %s3320_s18 = smov 0  }
   0x7   :  { %s3322_s19 = smov 0   ;;  %s3324_s20 = smov 0  }
   0x8   :  { %s3326_s21 = smov 0   ;;  %s3328_s22 = smov 0  }
   0x9 LB: > { %s2572_s23 = sadd.s32 4294967295, %s3247_s22   ;;  %s2573_s24 = sadd.s32 4294967294, %s3247_s22   ;;  %s3247_s22 = sphi %s3328_s22, %s28_s22   ;;  %s3243_s21 = sphi %s3326_s21, %s3980_s21   ;;  %s3239_s20 = sphi %s3324_s20, %s3979_s20   ;;  %s3235_s19 = sphi %s3322_s19, %s3978_s19   ;;  %s3231_s18 = sphi %s3320_s18, %s3977_s18   ;;  %s3227_s17 = sphi %s3318_s17, %s3976_s17  }
   0xa   : > { %s40_s25 = sadd.s32 1, %s3243_s21  ;;  %s276_s26 = sadd.s32 1, %s3235_s19 }
   0xb   : > { %p42_p0 = scmp.ge.s32.totalorder %s40_s25, 2  ;;  %p286_p1 = scmp.ne.s32.totalorder %s3235_s19, %s3231_s18 }
   0xc   : > { %p287_p2 = scmp.eq.s32.totalorder %s2572_s23, 1  ;;  %p292_p3 = scmp.ne.s32.totalorder %s3231_s18, %s3227_s17 }
   0xd   : > { %s3982_s25 = smov (%p42_p0, %s40_s25), 0  ;;  %p293_p5 = scmp.eq.s32.totalorder %s2573_s24, 1 }
   0xe   : > { %3969 = sst [smem:[#allocation8_spill]] %s3982_s25  ;;  %p3358_p4 = por %p287_p2, %p286_p1 }
   0xf   : > { %s271_s28 = ssub.s32 %s3243_s21, %s3982_s25  ;;  %p2576_p6 = scmp.ge.s32.totalorder %s3247_s22, 1 }
  0x10   : > { %p274_p7 = scmp.eq.s32.totalorder %s271_s28, 0  ;;  %p3365_p8 = por %p293_p5, %p292_p3 }
  0x11   : > { %p387_p9 = scmp.lt.s32.totalorder %s3247_s22, 3 }
  0x12   : > { %s3371_s30 = scalar_select %p274_p7, %s3235_s19, %s276_s26  }
  0x13   : > { %p388_p10 = pnand %p2576_p6, %p387_p9 }
  0x14   : > { %p445_p11 = scmp.lt.s32.totalorder (!%p388_p10), %s3239_s20, 1  ;;  %s3972_s0 = sld [smem:[#allocation9_spill]] (!%p388_p10) }
  0x15   : > { %391 = sbr.rel (%p388_p10) target bundleno = 2843 (0xb1b), region = 60  ;;  %s3973_s1 = sld [smem:[#allocation10_spill]] (!%p388_p10) }
  0x16   : > { %s3252_s23 = smov (!%p388_p10), [#allocation4]  }
  0x1a   : > { %v3249_v0 = vmov 0.0   ;;  %vm3250_vm0 = vmmov 0   ;;  %v477_v1 = vld [vmem:[%s3958_s4] sm:$0xff]  ;;  %s3381_s14 = scalar_select %p445_p11, %s3239_s20, 1  ;;  %v3251_v2 = vmov 0   ;;  %v478_v3 = vld [vmem:[%s3958_s4 + $0x8] sm:$0xff] }
  0x1b   : > { %2797 = vmatprep.subr.bf16.mxu0 %v3249_v0  ;;  %2801 = vmatprep.mubr.msk.bf16.mxu0 %vm3250_vm0, %v3249_v0  ;;  %v3001_v6 = vld [vmem:[%s3957_s3] sm:$0xff]   ;;  %vm506_vm1 = vcmask 261120   ;;  %vm581_vm2 = vcmask 1041408   ;;  %vm568_vm3 = vcmask 31744   ;;  %vm650_vm4 = vcmask 523264  }
  0x1c   : > { %2996 = vset.pattern.permute.xlu0 %v3251_v2  ;;  %s2697_s15 = sshll.u32 %s3381_s14, 4  ;;  %s2698_s25 = sshll.u32 %s3381_s14, 3  ;;  %vm779_vm5 = vcmask 519168   ;;  %vm1189_vm6 = vcmask 1043456  }
  0x1d   : > { %481 = vperm.xlu0 %2996, %v477_v1   ;;  %s452_s28 = scalar_lea.vmem %s3972_s0, %s2697_s15  ;;  %s3401_s24 = scalar_lea.vmem %s3973_s1, %s2698_s25 }
  0x1e   : > { %v2998_v4 = vld [vmem:[%s452_s28 + $0x8] sm:$0xff]   ;;  %v3000_v5 = vld [vmem:[%s452_s28] sm:$0xff]   ;;  %s3543_s28 = sand.u32 1, %s3231_s18   ;;  %s3597_s15 = scalar_lea.vmem %s3956_s2, %s2698_s25 }
  0x1f   : > { %2798 = vmatpush3.bf16.msra.mxu0 %v2998_v4  ;;  %v469_v7 = vld [vmem:[%s3401_s24] sm:$0xf]  ;;  %s2578_s12 = sshll.u32 %s3543_s28, 7  ;;  %s2733_s25 = sshll.u32 %s3239_s20, 11 }
  0x20   : > { %2799 = vmatprep.subr.bf16.mxu0 %v3249_v0  ;;  %v2602_v8 = vcombine.low %v469_v7, %v469_v7  ;;  %2925 = vmatprep.subr.msk.bf16.mxu1 %vm581_vm2, %v469_v7  ;;  %v583_v12 = vsel %vm581_vm2, %v469_v7, 0  ;;  %s3548_s13 = scalar_lea.vmem [#allocation4], %s2578_s12  ;;  %s3864_s0 = scalar_lea.hbm %s3965_s11, %s2733_s25 }
  0x21   : > { %486 = vperm.xlu0 %2996, %v478_v3   ;;  %2806 = vmatpush3.bf16.msra.mxu1 %v583_v12  ;;  %s2435_s26 = sshll.u32 %s3548_s13, 4  ;;  %s3867_s26 = int_to_ptr.vmem [resolvable:$true] %s2435_s26 }
  0x22   : > { %v865_v9 = vrot.slane %v2602_v8, 2  ;;  %2815 = vmatprep.subr.bf16.mxu1 %v3249_v0  ;;  %s3141_s16 = scalar_lea.vmem %s3867_s26, 2048 }
  0x23   : > { %2800 = vmatpush3.bf16.msra.mxu0 %v3000_v5  ;;  %p3142_p12 = scmp.ne.s32.totalorder %s3867_s26, %s3141_s16 }
  0x24   : > { %2926 = vmatprep.subr.msk.bf16.mxu0 %vm581_vm2, %v865_v9  ;;  %v879_v10 = vsel %vm581_vm2, %v865_v9, 0 }
  0x25   : > { %p3143_p13 = pnand %p3142_p12, %p3358_p4 }
  0x26   : > { %2802 = vmatmul.mubr.msk.bf16.vlgmr.msra.gmra.mxu0 %vm506_vm1, %v3001_v6 }
  0x27   : > { %2828 = vmatpush3.bf16.msra.mxu0 %v879_v10  ;;  %p3144_p0 = pneg %p3143_p13 }
  0x28   : > { %2837 = vmatprep.subr.bf16.mxu0 %v3249_v0 }
  0x98   : > { %v482_v11 = vpop.permute.xlu0 %481 }
  0x9c   : > { %v487_v15 = vpop.permute.xlu0 %486 }
  0xe6   : > { %v544_v13 = vpop.f32.mrf.mxu0 }
  0xe7   : > { %v545_v17 = vadd.f32 %v544_v13, %v482_v11 }
  0xe8   : > { %v2803_v14 = vpop.f32.mrf.mxu0 }
  0xea   : > { %v547_v16 = vpop.f32.mrf.mxu0 }
  0xeb   : > { %v548_v18 = vadd.f32 %v547_v16, %v487_v15 }
  0xec   : > { %v2804_v19 = vpop.f32.mrf.mxu0 }
  0xed   : > { %v3410_v20 = vpack.c.bf16 %v548_v18, %v545_v17 }
  0xef   : > { %v844_v21 = vrot.slane %v3410_v20, 2 }
  0xf1   : > { %846 = vxpose.xlu1.c.b16.start.end [1/1] (short) (narrow) %v844_v21, 64 }
  0xfe   : > { %552 = vxpose.xlu1.c.b16.start.end [1/1] (short) (narrow) %v3410_v20, 64 }
 0x153   : > { %v854_v22 = vpop.trf.xlu1 }
 0x154   : > { %2829 = vmatprep.mubr.msk.bf16.mxu0 %vm568_vm3, %v854_v22 }
 0x157   : > { %v855_v23 = vpop.trf.xlu1 }
 0x158   : > { %2830 = vmatmul.mubr.msk.bf16.vlgmr.msra.gmra.mxu0 %vm568_vm3, %v855_v23 }
 0x15b   : > { %v856_v24 = vpop.trf.xlu1 }
 0x15c   : > { %2833 = vmatprep.mubr.msk.bf16.mxu0 %vm568_vm3, %v856_v24 }
 0x15f   : > { %v857_v25 = vpop.trf.xlu1 }
 0x160   : > { %2834 = vmatmul.mubr.msk.bf16.gmra.mxu0 %vm568_vm3, %v857_v25 }
 0x161   : > { %2845 = vmatprep.mubr.msk.bf16.mxu0 %vm3250_vm0, %v3249_v0 }
 0x163   : > { %v560_v26 = vpop.trf.xlu1 }
 0x164   : > { %2807 = vmatprep.mubr.msk.bf16.mxu1 %vm568_vm3, %v560_v26 }
 0x167   : > { %v561_v27 = vpop.trf.xlu1 }
 0x168   : > { %2808 = vmatmul.mubr.msk.bf16.vlgmr.msra.gmra.mxu1 %vm568_vm3, %v561_v27 }
 0x16b   : > { %v562_v28 = vpop.trf.xlu1 }
 0x16c   : > { %2811 = vmatprep.mubr.msk.bf16.mxu1 %vm568_vm3, %v562_v28 }
 0x16f   : > { %v563_v29 = vpop.trf.xlu1 }
 0x170   : > { %2812 = vmatmul.mubr.msk.bf16.gmra.mxu1 %vm568_vm3, %v563_v29 }
 0x171   : > { %2823 = vmatprep.mubr.msk.bf16.mxu1 %vm3250_vm0, %v3249_v0 }
 0x218   : > { %v3426_v30 = vpop.f32.mrf.mxu0 }
 0x219   : > { %v952_v53 = vsel %vm650_vm4, %v3426_v30, -inf }
 0x21a   : > { %v3428_v31 = vpop.f32.mrf.mxu0 }
 0x21b   : > { %v946_v57 = vsel %vm650_vm4, %v3428_v31, -inf }
 0x21c   : > { %v3430_v32 = vpop.f32.mrf.mxu0 }
 0x21d   : > { %v955_v56 = vsel %vm650_vm4, %v3430_v32, -inf }
 0x21e   : > { %v3432_v33 = vpop.f32.mrf.mxu0 }
 0x21f   : > { %v949_v60 = vsel %vm650_vm4, %v3432_v33, -inf }
 0x220   : > { %v2835_v34 = vpop.f32.mrf.mxu0 }
 0x221   : > { %v964_v35 = vsel %vm650_vm4, %v2835_v34, -inf }
 0x222   : > { %965 = vmax.xlane.f32.xlu0 %v964_v35  ;;  %v931_v36 = vpop.f32.mrf.mxu0 }
 0x223   : > { %v958_v47 = vsel %vm650_vm4, %v931_v36, -inf }
 0x224   : > { %v2836_v37 = vpop.f32.mrf.mxu0 }
 0x225   : > { %v967_v38 = vsel %vm650_vm4, %v2836_v37, -inf }
 0x226   : > { %968 = vmax.xlane.f32.xlu1 %v967_v38  ;;  %v934_v49 = vpop.f32.mrf.mxu0 }
 0x227   : > { %v961_v51 = vsel %vm650_vm4, %v934_v49, -inf }
 0x228   : > { %v3436_v39 = vpop.f32.mrf.mxu1 }
 0x229   : > { %v657_v55 = vsel %vm650_vm4, %v3436_v39, -inf }
 0x22a   : > { %v3438_v40 = vpop.f32.mrf.mxu1 }
 0x22b   : > { %v651_v59 = vsel %vm650_vm4, %v3438_v40, -inf }
 0x22c   : > { %v3440_v41 = vpop.f32.mrf.mxu1 }
 0x22d   : > { %v660_v58 = vsel %vm650_vm4, %v3440_v41, -inf }
 0x22e   : > { %v3442_v42 = vpop.f32.mrf.mxu1 }
 0x22f   : > { %v654_v61 = vsel %vm650_vm4, %v3442_v42, -inf }
 0x230   : > { %v2813_v43 = vpop.f32.mrf.mxu1 }
 0x231   : > { %v669_v44 = vsel %vm650_vm4, %v2813_v43, -inf }
 0x232   : > { %v635_v45 = vpop.f32.mrf.mxu1  ;;  %670 = vmax.xlane.f32.xlu0 %v669_v44 }
 0x233   : > { %v663_v50 = vsel %vm650_vm4, %v635_v45, -inf }
 0x234   : > { %v2814_v46 = vpop.f32.mrf.mxu1 }
 0x235   : > { %v672_v48 = vsel %vm650_vm4, %v2814_v46, -inf }
 0x236   : > { %959 = vmax.xlane.f32.xlu0 %v958_v47  ;;  %673 = vmax.xlane.f32.xlu1 %v672_v48  ;;  %v638_v52 = vpop.f32.mrf.mxu1 }
 0x237   : > { %v666_v54 = vsel %vm650_vm4, %v638_v52, -inf }
 0x23a   : > { %664 = vmax.xlane.f32.xlu0 %v663_v50  ;;  %962 = vmax.xlane.f32.xlu1 %v961_v51 }
 0x23e   : > { %953 = vmax.xlane.f32.xlu0 %v952_v53  ;;  %667 = vmax.xlane.f32.xlu1 %v666_v54 }
 0x242   : > { %658 = vmax.xlane.f32.xlu0 %v657_v55  ;;  %956 = vmax.xlane.f32.xlu1 %v955_v56 }
 0x246   : > { %947 = vmax.xlane.f32.xlu0 %v946_v57  ;;  %661 = vmax.xlane.f32.xlu1 %v660_v58 }
 0x24a   : > { %652 = vmax.xlane.f32.xlu0 %v651_v59  ;;  %950 = vmax.xlane.f32.xlu1 %v949_v60 }
 0x24e   : > { %655 = vmax.xlane.f32.xlu1 %v654_v61 }
 0x2ab   : > { %v966_v62 = vpop.xlane.xlu0 %965 }
 0x2ac   : > { %v976_v63 = vsub.f32 %v2835_v34, %v966_v62 }
 0x2ae   : > { %v990_v1 = vmul.f32 1.442695, %v976_v63 }
 0x2af   : > { %v969_v3 = vpop.xlane.xlu1 %968 }
 0x2b0   : > { %3005 = vpow2.f32 %v990_v1  ;;  %v977_v4 = vsub.f32 %v2836_v37, %v969_v3 }
 0x2b2   : > { %v992_v5 = vmul.f32 1.442695, %v977_v4 }
 0x2b4   : > { %3007 = vpow2.f32 %v992_v5 }
 0x2bb   : > { %v671_v6 = vpop.xlane.xlu0 %670 }
 0x2bc   : > { %v681_v7 = vsub.f32 %v2813_v43, %v671_v6 }
 0x2bd   : > { %v3466_v8 = vpop.eup %3005 }
 0x2be   : > { %v695_v9 = vmul.f32 1.442695, %v681_v7  ;;  %v1012_v10 = vsel %vm650_vm4, %v3466_v8, 0.0 }
 0x2bf   : > { %1013 = vadd.xlane.f32.xlu0 %v1012_v10  ;;  %v960_v11 = vpop.xlane.xlu0 %959  ;;  %v674_v12 = vpop.xlane.xlu1 %673 }
 0x2c0   : > { %3009 = vpow2.f32 %v695_v9  ;;  %v974_v13 = vsub.f32 %v931_v36, %v960_v11  ;;  %v682_v14 = vsub.f32 %v2814_v46, %v674_v12 }
 0x2c1   : > { %v3470_v15 = vpop.eup %3007 }
 0x2c2   : > { %v986_v16 = vmul.f32 1.442695, %v974_v13  ;;  %v697_v17 = vmul.f32 1.442695, %v682_v14  ;;  %v1015_v18 = vsel %vm650_vm4, %v3470_v15, 0.0 }
 0x2c3   : > { %v665_v19 = vpop.xlane.xlu0 %664  ;;  %1016 = vadd.xlane.f32.xlu1 %v1015_v18  ;;  %v963_v21 = vpop.xlane.xlu1 %962 }
 0x2c4   : > { %3011 = vpow2.f32 %v986_v16  ;;  %v679_v22 = vsub.f32 %v635_v45, %v665_v19  ;;  %v975_v23 = vsub.f32 %v934_v49, %v963_v21 }
 0x2c5   : > { %3013 = vpow2.f32 %v697_v17 }
 0x2c6   : > { %v691_v24 = vmul.f32 1.442695, %v679_v22  ;;  %v988_v25 = vmul.f32 1.442695, %v975_v23  ;;  %v473_v22 = vld [vmem:[%s3959_s5] sm:$0xff] }
 0x2c7   : > { %v954_v26 = vpop.xlane.xlu0 %953  ;;  %v668_v27 = vpop.xlane.xlu1 %667  ;;  %v1143_v23 = vrot.slane %v473_v22, 4 }
 0x2c8   : > { %3015 = vpow2.f32 %v691_v24  ;;  %v972_v28 = vsub.f32 %v3426_v30, %v954_v26  ;;  %v680_v29 = vsub.f32 %v638_v52, %v668_v27  ;;  %v1410_v24 = vrot.slane %v3410_v20, 4 }
 0x2c9   : > { %3017 = vpow2.f32 %v988_v25 }
 0x2ca   : > { %v982_v34 = vmul.f32 1.442695, %v972_v28  ;;  %v693_v35 = vmul.f32 1.442695, %v680_v29 }
 0x2cb   : > { %v659_v36 = vpop.xlane.xlu0 %658  ;;  %v957_v37 = vpop.xlane.xlu1 %956 }
 0x2cc   : > { %3019 = vpow2.f32 %v982_v34  ;;  %v677_v38 = vsub.f32 %v3436_v39, %v659_v36  ;;  %v973_v43 = vsub.f32 %v3430_v32, %v957_v37 }
 0x2cd   : > { %v3477_v44 = vpop.eup %3009  ;;  %3021 = vpow2.f32 %v693_v35 }
 0x2ce   : > { %v687_v45 = vmul.f32 1.442695, %v677_v38  ;;  %v984_v46 = vmul.f32 1.442695, %v973_v43  ;;  %v717_v47 = vsel %vm650_vm4, %v3477_v44, 0.0 }
 0x2cf   : > { %718 = vadd.xlane.f32.xlu0 %v717_v47  ;;  %v948_v30 = vpop.xlane.xlu0 %947  ;;  %v662_v48 = vpop.xlane.xlu1 %661 }
 0x2d0   : > { %3023 = vpow2.f32 %v687_v45  ;;  %v970_v49 = vsub.f32 %v3428_v31, %v948_v30  ;;  %v678_v50 = vsub.f32 %v3440_v41, %v662_v48 }
 0x2d1   : > { %v3483_v51 = vpop.eup %3011  ;;  %3025 = vpow2.f32 %v984_v46 }
 0x2d2   : > { %v3485_v32 = vpop.eup %3013  ;;  %v978_v39 = vmul.f32 1.442695, %v970_v49  ;;  %v689_v52 = vmul.f32 1.442695, %v678_v50  ;;  %v1006_v53 = vsel %vm650_vm4, %v3483_v51, 0.0 }
 0x2d3   : > { %1007 = vadd.xlane.f32.xlu0 %v1006_v53  ;;  %v653_v54 = vpop.xlane.xlu0 %652  ;;  %v720_v55 = vsel %vm650_vm4, %v3485_v32, 0.0  ;;  %v951_v56 = vpop.xlane.xlu1 %950 }
 0x2d4   : > { %3027 = vpow2.f32 %v978_v39  ;;  %v675_v31 = vsub.f32 %v3438_v40, %v653_v54  ;;  %721 = vadd.xlane.f32.xlu1 %v720_v55  ;;  %v971_v41 = vsub.f32 %v3432_v33, %v951_v56 }
 0x2d5   : > { %v3493_v57 = vpop.eup %3015  ;;  %3029 = vpow2.f32 %v689_v52 }
 0x2d6   : > { %v3495_v58 = vpop.eup %3017  ;;  %v683_v59 = vmul.f32 1.442695, %v675_v31  ;;  %v980_v60 = vmul.f32 1.442695, %v971_v41  ;;  %v711_v61 = vsel %vm650_vm4, %v3493_v57, 0.0 }
 0x2d7   : > { %712 = vadd.xlane.f32.xlu0 %v711_v61  ;;  %v1009_v62 = vsel %vm650_vm4, %v3495_v58, 0.0  ;;  %v656_v63 = vpop.xlane.xlu1 %655 }
 0x2d8   : > { %3031 = vpow2.f32 %v683_v59  ;;  %1010 = vadd.xlane.f32.xlu1 %v1009_v62  ;;  %v676_v40 = vsub.f32 %v3442_v42, %v656_v63 }
 0x2d9   : > { %v3502_v33 = vpop.eup %3019  ;;  %3033 = vpow2.f32 %v980_v60 }
 0x2da   : > { %v3504_v1 = vpop.eup %3021  ;;  %v685_v3 = vmul.f32 1.442695, %v676_v40  ;;  %v1000_v4 = vsel %vm650_vm4, %v3502_v33, 0.0 }
 0x2db   : > { %1001 = vadd.xlane.f32.xlu0 %v1000_v4  ;;  %v714_v5 = vsel %vm650_vm4, %v3504_v1, 0.0 }
 0x2dc   : > { %3035 = vpow2.f32 %v685_v3  ;;  %715 = vadd.xlane.f32.xlu1 %v714_v5 }
 0x2dd   : > { %v3510_v6 = vpop.eup %3023 }
 0x2de   : > { %v3512_v7 = vpop.eup %3025  ;;  %v705_v42 = vsel %vm650_vm4, %v3510_v6, 0.0 }
 0x2df   : > { %706 = vadd.xlane.f32.xlu0 %v705_v42  ;;  %v1003_v9 = vsel %vm650_vm4, %v3512_v7, 0.0 }
 0x2e0   : > { %1004 = vadd.xlane.f32.xlu1 %v1003_v9 }
 0x2e1   : > { %v3518_v10 = vpop.eup %3027 }
 0x2e2   : > { %v3520_v11 = vpop.eup %3029  ;;  %v994_v12 = vsel %vm650_vm4, %v3518_v10, 0.0 }
 0x2e3   : > { %995 = vadd.xlane.f32.xlu0 %v994_v12  ;;  %v708_v13 = vsel %vm650_vm4, %v3520_v11, 0.0 }
 0x2e4   : > { %709 = vadd.xlane.f32.xlu1 %v708_v13 }
 0x2e5   : > { %v3526_v14 = vpop.eup %3031 }
 0x2e6   : > { %v3528_v16 = vpop.eup %3033  ;;  %v699_v17 = vsel %vm650_vm4, %v3526_v14, 0.0 }
 0x2e7   : > { %700 = vadd.xlane.f32.xlu0 %v699_v17  ;;  %v997_v18 = vsel %vm650_vm4, %v3528_v16, 0.0 }
 0x2e8   : > { %998 = vadd.xlane.f32.xlu1 %v997_v18 }
 0x2e9   : > { %v3534_v19 = vpop.eup %3035 }
 0x2ea   : > { %v702_v21 = vsel %vm650_vm4, %v3534_v19, 0.0 }
 0x2ec   : > { %703 = vadd.xlane.f32.xlu1 %v702_v21 }
 0x314   : > { %1145 = vxpose.xlu0.b32.start.end [1/1] (short) (narrow) %v1143_v23, 32 }
 0x31f   : > { %1278 = vxpose.xlu1.b32.start.end [1/1] (short) (narrow) %v473_v22, 32 }
 0x344   : > { %1412 = vxpose.xlu0.c.b16.start.end [1/1] (short) (narrow) %v1410_v24, 64 }
 0x348   : > { %v1014_v25 = vpop.xlane.xlu0 %1013 }
 0x349   : > { %3037 = vrcp.f32 %v1014_v25 }
 0x34c   : > { %v1017_v26 = vpop.xlane.xlu1 %1016 }
 0x34d   : > { %3039 = vrcp.f32 %v1017_v26 }
 0x356   : > { %v3038_v27 = vpop.eup %3037 }
 0x357   : > { %v1040_v28 = vmul.f32 %v3038_v27, %v3466_v8 }
 0x358   : > { %v719_v29 = vpop.xlane.xlu0 %718 }
 0x359   : > { %3041 = vrcp.f32 %v719_v29  ;;  %v2714_v34 = vpack.c.bf16 %v1040_v28, %v1040_v28 }
 0x35a   : > { %v3040_v35 = vpop.eup %3039 }
 0x35b   : > { %v1041_v36 = vmul.f32 %v3040_v35, %v3470_v15  ;;  %2621 = vst.msk [vmem:[%s3548_s13 + $0x38] sm:$0xf] %vm779_vm5, %v2714_v34 }
 0x35c   : > { %v1008_v37 = vpop.xlane.xlu0 %1007 }
 0x35d   : > { %3043 = vrcp.f32 %v1008_v37  ;;  %v722_v38 = vpop.xlane.xlu1 %721  ;;  %v1045_v43 = vpack.c.bf16 %v1041_v36, %v1040_v28  ;;  %v2715_v45 = vpack.c.bf16 %v1041_v36, %v1041_v36 }
 0x35e   : > { %3045 = vrcp.f32 %v722_v38 }
 0x35f   : > { %2622 = vst.msk [vmem:[%s3548_s13 + $0x3c] sm:$0xf] %vm779_vm5, %v2715_v45  ;;  %v1100_v8 = vsel %vm650_vm4, %v1045_v43, 0 }
 0x360   : > { %v713_v46 = vpop.xlane.xlu0 %712  ;;  %2838 = vmatpush3.bf16.xpose.msra.mxu0 %v1100_v8 }
 0x361   : > { %3047 = vrcp.f32 %v713_v46  ;;  %v1011_v15 = vpop.xlane.xlu1 %1010  ;;  %2839 = vmatprep.subr.bf16.mxu0 %v3249_v0  ;;  %v471_v46 = vld [vmem:[%s3597_s15] sm:$0xf] }
 0x362   : > { %3049 = vrcp.f32 %v1011_v15 }
 0x364   : > { %v1002_v47 = vpop.xlane.xlu0 %1001 }
 0x365   : > { %3051 = vrcp.f32 %v1002_v47  ;;  %v716_v30 = vpop.xlane.xlu1 %715 }
 0x366   : > { %v3042_v48 = vpop.eup %3041  ;;  %3053 = vrcp.f32 %v716_v30 }
 0x367   : > { %v745_v49 = vmul.f32 %v3042_v48, %v3477_v44 }
 0x368   : > { %v707_v50 = vpop.xlane.xlu0 %706 }
 0x369   : > { %3055 = vrcp.f32 %v707_v50  ;;  %v1005_v39 = vpop.xlane.xlu1 %1004  ;;  %v2706_v52 = vpack.c.bf16 %v745_v49, %v745_v49 }
 0x36a   : > { %v3044_v53 = vpop.eup %3043  ;;  %3057 = vrcp.f32 %v1005_v39 }
 0x36b   : > { %v3046_v54 = vpop.eup %3045  ;;  %786 = vst.msk [vmem:[%s3548_s13 + $0x18] sm:$0xf] %vm779_vm5, %v2706_v52  ;;  %v1038_v55 = vmul.f32 %v3044_v53, %v3483_v51 }
 0x36c   : > { %v996_v56 = vpop.xlane.xlu0 %995  ;;  %v746_v31 = vmul.f32 %v3046_v54, %v3485_v32 }
 0x36d   : > { %3059 = vrcp.f32 %v996_v56  ;;  %v710_v41 = vpop.xlane.xlu1 %709  ;;  %v2712_v59 = vpack.c.bf16 %v1038_v55, %v1038_v55 }
 0x36e   : > { %v3048_v44 = vpop.eup %3047  ;;  %3061 = vrcp.f32 %v710_v41  ;;  %v750_v60 = vpack.c.bf16 %v746_v31, %v745_v49  ;;  %v2707_v61 = vpack.c.bf16 %v746_v31, %v746_v31  ;;  %v2623_v49 = vcombine.low %v471_v46, %v471_v46 }
 0x36f   : > { %v3050_v62 = vpop.eup %3049  ;;  %2619 = vst.msk [vmem:[%s3548_s13 + $0x30] sm:$0xf] %vm779_vm5, %v2712_v59  ;;  %v743_v63 = vmul.f32 %v3048_v44, %v3493_v57 }
 0x370   : > { %v701_v40 = vpop.xlane.xlu0 %700  ;;  %787 = vst.msk [vmem:[%s3548_s13 + $0x1c] sm:$0xf] %vm779_vm5, %v2707_v61  ;;  %v801_v51 = vsel %vm650_vm4, %v750_v60, 0  ;;  %v1039_v32 = vmul.f32 %v3050_v62, %v3495_v58  ;;  %v1086_v52 = vrot.slane %v2623_v49, 2  ;;  %v3626_v62 = vld [vmem:[%s3401_s24 + $0x4] sm:$0xf] }
 0x371   : > { %3063 = vrcp.f32 %v701_v40  ;;  %2816 = vmatpush3.bf16.xpose.msra.mxu1 %v801_v51  ;;  %v999_v3 = vpop.xlane.xlu1 %998  ;;  %v2704_v4 = vpack.c.bf16 %v743_v63, %v743_v63 }
 0x372   : > { %v3052_v5 = vpop.eup %3051  ;;  %3065 = vrcp.f32 %v999_v3  ;;  %v1044_v42 = vpack.c.bf16 %v1039_v32, %v1038_v55  ;;  %v2713_v9 = vpack.c.bf16 %v1039_v32, %v1039_v32  ;;  %2817 = vmatprep.subr.bf16.mxu1 %v3249_v0 }
 0x373   : > { %v3054_v57 = vpop.eup %3053  ;;  %784 = vst.msk [vmem:[%s3548_s13 + $0x10] sm:$0xf] %vm779_vm5, %v2704_v4  ;;  %v1036_v12 = vmul.f32 %v3052_v5, %v3502_v33  ;;  %v1441_v4 = vsel %vm581_vm2, %v3626_v62, 0 }
 0x374   : > { %2620 = vst.msk [vmem:[%s3548_s13 + $0x34] sm:$0xf] %vm779_vm5, %v2713_v9  ;;  %v1097_v58 = vsel %vm650_vm4, %v1044_v42, 0  ;;  %v744_v13 = vmul.f32 %v3054_v57, %v3504_v1 }
 0x375   : > { %2840 = vmatpush3.bf16.xpose.msra.mxu0 %v1097_v58  ;;  %v704_v17 = vpop.xlane.xlu1 %703  ;;  %v2710_v18 = vpack.c.bf16 %v1036_v12, %v1036_v12 }
 0x376   : > { %v3056_v21 = vpop.eup %3055  ;;  %3067 = vrcp.f32 %v704_v17  ;;  %v749_v22 = vpack.c.bf16 %v744_v13, %v743_v63  ;;  %v2705_v23 = vpack.c.bf16 %v744_v13, %v744_v13  ;;  %2841 = vmatprep.subr.bf16.mxu0 %v3249_v0 }
 0x377   : > { %v3058_v24 = vpop.eup %3057  ;;  %2617 = vst.msk [vmem:[%s3548_s13 + $0x28] sm:$0xf] %vm779_vm5, %v2710_v18  ;;  %v741_v33 = vmul.f32 %v3056_v21, %v3510_v6 }
 0x378   : > { %785 = vst.msk [vmem:[%s3548_s13 + $0x14] sm:$0xf] %vm779_vm5, %v2705_v23  ;;  %v798_v1 = vsel %vm650_vm4, %v749_v22, 0  ;;  %v1037_v25 = vmul.f32 %v3058_v24, %v3512_v7 }
 0x379   : > { %2818 = vmatpush3.bf16.xpose.msra.mxu1 %v798_v1  ;;  %v2702_v26 = vpack.c.bf16 %v741_v33, %v741_v33 }
 0x37a   : > { %v3060_v27 = vpop.eup %3059  ;;  %v1043_v28 = vpack.c.bf16 %v1037_v25, %v1036_v12  ;;  %v2711_v29 = vpack.c.bf16 %v1037_v25, %v1037_v25  ;;  %2819 = vmatprep.subr.bf16.mxu1 %v3249_v0 }
 0x37b   : > { %v3062_v34 = vpop.eup %3061  ;;  %782 = vst.msk [vmem:[%s3548_s13 + $0x8] sm:$0xf] %vm779_vm5, %v2702_v26  ;;  %v1034_v6 = vmul.f32 %v3060_v27, %v3518_v10 }
 0x37c   : > { %2618 = vst.msk [vmem:[%s3548_s13 + $0x2c] sm:$0xf] %vm779_vm5, %v2711_v29  ;;  %v1094_v35 = vsel %vm650_vm4, %v1043_v28, 0  ;;  %v742_v7 = vmul.f32 %v3062_v34, %v3520_v11 }
 0x37d   : > { %2842 = vmatpush3.bf16.xpose.msra.mxu0 %v1094_v35  ;;  %v2708_v36 = vpack.c.bf16 %v1034_v6, %v1034_v6 }
 0x37e   : > { %v3064_v37 = vpop.eup %3063  ;;  %v748_v38 = vpack.c.bf16 %v742_v7, %v741_v33  ;;  %v2703_v43 = vpack.c.bf16 %v742_v7, %v742_v7  ;;  %2843 = vmatprep.subr.bf16.mxu0 %v3249_v0 }
 0x37f   : > { %v3066_v10 = vpop.eup %3065  ;;  %2615 = vst.msk [vmem:[%s3548_s13 + $0x20] sm:$0xf] %vm779_vm5, %v2708_v36  ;;  %v739_v11 = vmul.f32 %v3064_v37, %v3526_v14 }
 0x380   : > { %783 = vst.msk [vmem:[%s3548_s13 + $0xc] sm:$0xf] %vm779_vm5, %v2703_v43  ;;  %v795_v45 = vsel %vm650_vm4, %v748_v38, 0  ;;  %v1035_v8 = vmul.f32 %v3066_v10, %v3528_v16 }
 0x381   : > { %2820 = vmatpush3.bf16.xpose.msra.mxu1 %v795_v45  ;;  %v2700_v15 = vpack.c.bf16 %v739_v11, %v739_v11 }
 0x382   : > { %v1042_v47 = vpack.c.bf16 %v1035_v8, %v1034_v6  ;;  %v2709_v30 = vpack.c.bf16 %v1035_v8, %v1035_v8  ;;  %2821 = vmatprep.subr.bf16.mxu1 %v3249_v0 }
 0x383   : > { %v3068_v48 = vpop.eup %3067  ;;  %780 = vst.msk [vmem:[%s3548_s13] sm:$0xf] %vm779_vm5, %v2700_v15 }
 0x384   : > { %2616 = vst.msk [vmem:[%s3548_s13 + $0x24] sm:$0xf] %vm779_vm5, %v2709_v30  ;;  %v1091_v14 = vsel %vm650_vm4, %v1042_v47, 0  ;;  %v740_v50 = vmul.f32 %v3068_v48, %v3534_v19 }
 0x385   : > { %2844 = vmatpush3.bf16.xpose.msra.mxu0 %v1091_v14 }
 0x386   : > { %v747_v16 = vpack.c.bf16 %v740_v50, %v739_v11  ;;  %v2701_v39 = vpack.c.bf16 %v740_v50, %v740_v50 }
 0x388   : > { %781 = vst.msk [vmem:[%s3548_s13 + $0x4] sm:$0xf] %vm779_vm5, %v2701_v39  ;;  %v792_v53 = vsel %vm650_vm4, %v747_v16, 0 }
 0x389   : > { %2822 = vmatpush3.bf16.xpose.msra.mxu1 %v792_v53 }
 0x38c   : > { %2846 = vmatmul.mubr.msk.bf16.vlgmr.msra.gmra.mxu0 %vm650_vm4, %v1086_v52 }
 0x390   : > { %2824 = vmatmul.mubr.msk.bf16.vlgmr.msra.gmra.mxu1 %vm650_vm4, %v471_v46  ;;  %v1161_v54 = vpop.trf.xlu0 }
 0x391   : > { %2851 = vmatprep.mubr.msk.f32.mxu1 %vm568_vm3, %v1161_v54 }
 0x394   : > { %v1162_v55 = vpop.trf.xlu0 }
 0x398   : > { %v1163_v19 = vpop.trf.xlu0 }
 0x39b   : > { %v1294_v56 = vpop.trf.xlu1 }
 0x39c   : > { %v1164_v59 = vpop.trf.xlu0 }
 0x39f   : > { %v1295_v31 = vpop.trf.xlu1 }
 0x3a3   : > { %v1296_v63 = vpop.trf.xlu1 }
 0x3a6   : > { %v1420_v40 = vpop.trf.xlu0 }
 0x3a7   : > { %v1297_v9 = vpop.trf.xlu1 }
 0x3aa   : > { %v1421_v42 = vpop.trf.xlu0 }
 0x3ae   : > { %v1422_v57 = vpop.trf.xlu0 }
 0x3b2   : > { %v1423_v12 = vpop.trf.xlu0 }
 0x44c   : > { %v1136_v41 = vpop.f32.mrf.mxu0 }
 0x44d   : > { %2849 = vmatprep.subr.msk.mxu1 %vm1189_vm6, %v1136_v41 }
 0x44e   : > { %v2847_v44 = vpop.f32.mrf.mxu0  ;;  %2850 = vmatpush3.msk.msra.mxu1 %vm1189_vm6, %v1136_v41 }
 0x44f   : > { %2852 = vmatmul.mubr.msk.f32.vlgmr.msra.gmra.mxu1 %vm568_vm3, %v1162_v55 }
 0x450   : > { %v837_v60 = vpop.f32.mrf.mxu1  ;;  %v1139_v61 = vpop.f32.mrf.mxu0  ;;  %2854 = vmatprep.mubr.msk.f32.mxu1 %vm568_vm3, %v1163_v19 }
 0x451   : > { %2857 = vmatprep.subr.msk.mxu1 %vm1189_vm6, %v837_v60 }
 0x452   : > { %v2825_v51 = vpop.f32.mrf.mxu1  ;;  %v2848_v32 = vpop.f32.mrf.mxu0  ;;  %2858 = vmatpush3.msk.msra.mxu1 %vm1189_vm6, %v837_v60 }
 0x453   : > { %2855 = vmatmul.mubr.msk.f32.gmra.mxu1 %vm568_vm3, %v1164_v59  ;;  %2927 = vmatprep.subr.msk.bf16.mxu1 %vm581_vm2, %v3626_v62 }
 0x454   : > { %v840_v3 = vpop.f32.mrf.mxu1  ;;  %2859 = vmatprep.mubr.msk.f32.mxu1 %vm568_vm3, %v1294_v56 }
 0x456   : > { %v2826_v5 = vpop.f32.mrf.mxu1 }
 0x457   : > { %2860 = vmatmul.mubr.msk.f32.vlgmr.msra.gmra.mxu1 %vm568_vm3, %v1295_v31 }
 0x458   : > { %2862 = vmatprep.mubr.msk.f32.mxu1 %vm568_vm3, %v1296_v63  ;;  %2866 = vmatpush3.bf16.msra.mxu1 %v1441_v4 }
 0x459   : > { %2875 = vmatprep.subr.bf16.mxu1 %v3249_v0 }
 0x45b   : > { %2863 = vmatmul.mubr.msk.f32.gmra.mxu1 %vm568_vm3, %v1297_v9 }
 0x45c   : > { %2867 = vmatprep.mubr.msk.bf16.mxu1 %vm568_vm3, %v1420_v40 }
 0x45f   : > { %2868 = vmatmul.mubr.msk.bf16.vlgmr.msra.gmra.mxu1 %vm568_vm3, %v1421_v42 }
 0x460   : > { %2871 = vmatprep.mubr.msk.bf16.mxu1 %vm568_vm3, %v1422_v57 }
 0x467   : > { %2872 = vmatmul.mubr.msk.bf16.gmra.mxu1 %vm568_vm3, %v1423_v12 }
 0x468   : > { %2883 = vmatprep.mubr.msk.bf16.mxu1 %vm3250_vm0, %v3249_v0 }
 0x50f   : > { %v2853_v58 = vpop.f32.mrf.mxu1 }
 0x511   : > { %v1259_v13 = vpop.f32.mrf.mxu1 }
 0x513   : > { %v2856_v17 = vpop.f32.mrf.mxu1 }
 0x515   : > { %v1269_v18 = vpop.f32.mrf.mxu1 }
 0x517   : > { %v2861_v21 = vpop.f32.mrf.mxu1 }
 0x518   : > { %v3646_v22 = vadd.f32 %v2861_v21, %v2853_v58 }
 0x519   : > { %v1391_v23 = vpop.f32.mrf.mxu1 }
 0x51a   : > { %v3648_v24 = vadd.f32 %v1391_v23, %v1259_v13 }
 0x51b   : > { %v2864_v33 = vpop.f32.mrf.mxu1 }
 0x51c   : > { %v3650_v1 = vadd.f32 %v2864_v33, %v2856_v17 }
 0x51d   : > { %v1401_v25 = vpop.f32.mrf.mxu1 }
 0x51e   : > { %v3652_v26 = vadd.f32 %v1401_v25, %v1269_v18 }
 0x51f   : > { %v2869_v27 = vpop.f32.mrf.mxu1 }
 0x520   : > { %v1514_v45 = vsel %vm650_vm4, %v2869_v27, -inf }
 0x521   : > { %v1477_v28 = vpop.f32.mrf.mxu1 }
 0x522   : > { %v1508_v10 = vsel %vm650_vm4, %v1477_v28, -inf }
 0x523   : > { %v2870_v29 = vpop.f32.mrf.mxu1 }
 0x524   : > { %v1517_v8 = vsel %vm650_vm4, %v2870_v29, -inf }
 0x525   : > { %v1480_v34 = vpop.f32.mrf.mxu1 }
 0x526   : > { %v1511_v46 = vsel %vm650_vm4, %v1480_v34, -inf }
 0x527   : > { %v2873_v6 = vpop.f32.mrf.mxu1 }
 0x528   : > { %v1526_v35 = vsel %vm650_vm4, %v2873_v6, -inf }
 0x529   : > { %1527 = vmax.xlane.f32.xlu1 %v1526_v35  ;;  %v1493_v7 = vpop.f32.mrf.mxu1 }
 0x52a   : > { %v1520_v37 = vsel %vm650_vm4, %v1493_v7, -inf }
 0x52b   : > { %v2874_v36 = vpop.f32.mrf.mxu1 }
 0x52c   : > { %v1529_v38 = vsel %vm650_vm4, %v2874_v36, -inf }
 0x52d   : > { %1521 = vmax.xlane.f32.xlu1 %v1520_v37  ;;  %1530 = vmax.xlane.f32.xlu0 %v1529_v38  ;;  %v1496_v43 = vpop.f32.mrf.mxu1 }
 0x52e   : > { %v1523_v11 = vsel %vm650_vm4, %v1496_v43, -inf }
 0x531   : > { %1509 = vmax.xlane.f32.xlu0 %v1508_v10  ;;  %1524 = vmax.xlane.f32.xlu1 %v1523_v11 }
 0x535   : > { %1515 = vmax.xlane.f32.xlu1 %v1514_v45 }
 0x539   : > { %1518 = vmax.xlane.f32.xlu1 %v1517_v8 }
 0x53d   : > { %1512 = vmax.xlane.f32.xlu1 %v1511_v46 }
 0x5b2   : > { %v1528_v15 = vpop.xlane.xlu1 %1527 }
 0x5b3   : > { %v1538_v47 = vsub.f32 %v2873_v6, %v1528_v15 }
 0x5b5   : > { %v1552_v30 = vmul.f32 1.442695, %v1538_v47 }
 0x5b6   : > { %v1522_v48 = vpop.xlane.xlu1 %1521  ;;  %v1531_v49 = vpop.xlane.xlu0 %1530 }
 0x5b7   : > { %3069 = vpow2.f32 %v1552_v30  ;;  %v1536_v14 = vsub.f32 %v1493_v7, %v1522_v48  ;;  %v1539_v50 = vsub.f32 %v2874_v36, %v1531_v49 }
 0x5b9   : > { %v1548_v16 = vmul.f32 1.442695, %v1536_v14  ;;  %v1554_v39 = vmul.f32 1.442695, %v1539_v50 }
 0x5ba   : > { %v1510_v52 = vpop.xlane.xlu0 %1509  ;;  %v1525_v53 = vpop.xlane.xlu1 %1524 }
 0x5bb   : > { %3071 = vpow2.f32 %v1548_v16  ;;  %v1537_v54 = vsub.f32 %v1496_v43, %v1525_v53  ;;  %v1532_v55 = vsub.f32 %v1477_v28, %v1510_v52  ;;  %v3674_v28 = vld [vmem:[%s3959_s5 + $0x8] sm:$0xff] }
 0x5bc   : > { %3073 = vpow2.f32 %v1554_v39 }
 0x5bd   : > { %v1550_v56 = vmul.f32 1.442695, %v1537_v54  ;;  %v1540_v41 = vmul.f32 1.442695, %v1532_v55 }
 0x5be   : > { %v1516_v19 = vpop.xlane.xlu1 %1515 }
 0x5bf   : > { %v1534_v31 = vsub.f32 %v2869_v27, %v1516_v19  ;;  %3075 = vpow2.f32 %v1550_v56  ;;  %v1836_v27 = vrot.slane %v3410_v20, 6 }
 0x5c1   : > { %v1544_v59 = vmul.f32 1.442695, %v1534_v31 }
 0x5c2   : > { %v1519_v44 = vpop.xlane.xlu1 %1518 }
 0x5c3   : > { %3077 = vpow2.f32 %v1544_v59  ;;  %v1535_v60 = vsub.f32 %v2870_v29, %v1519_v44 }
 0x5c4   : > { %v3070_v61 = vpop.eup %3069  ;;  %3079 = vpow2.f32 %v1540_v41 }
 0x5c5   : > { %v1546_v63 = vmul.f32 1.442695, %v1535_v60  ;;  %v1574_v40 = vsel %vm650_vm4, %v3070_v61, 0.0 }
 0x5c6   : > { %1575 = vadd.xlane.f32.xlu0 %v1574_v40  ;;  %v1513_v51 = vpop.xlane.xlu1 %1512 }
 0x5c7   : > { %3081 = vpow2.f32 %v1546_v63  ;;  %v1533_v32 = vsub.f32 %v1480_v34, %v1513_v51 }
 0x5c8   : > { %v3072_v3 = vpop.eup %3071 }
 0x5c9   : > { %v3074_v4 = vpop.eup %3073  ;;  %v1542_v5 = vmul.f32 1.442695, %v1533_v32  ;;  %v1568_v42 = vsel %vm650_vm4, %v3072_v3, 0.0  ;;  %v3702_v32 = vld [vmem:[%s3597_s15 + $0x4] sm:$0xf]  ;;  %s3145_s15 = sshll.u32 %s3252_s23, 4  ;;  %s3146_s15 = int_to_ptr.vmem [resolvable:$false] %s3145_s15 }
 0x5ca   : > { %1569 = vadd.xlane.f32.xlu0 %v1568_v42  ;;  %v1577_v9 = vsel %vm650_vm4, %v3074_v4, 0.0  ;;  %s3147_s1 = scalar_lea.vmem %s3146_s15, 4096  ;;  %p3148_p1 = scmp.lt.s32.totalorder %s3867_s26, %s3146_s15 }
 0x5cb   : > { %3083 = vpow2.f32 %v1542_v5  ;;  %1578 = vadd.xlane.f32.xlu1 %v1577_v9  ;;  %v2661_v5 = vcombine.low %v3626_v62, %v3626_v62  ;;  %p3149_p2 = scmp.lt.s32.totalorder %s3147_s1, %s3141_s16 }
 0x5cc   : > { %v3076_v57 = vpop.eup %3075 }
 0x5cd   : > { %v1571_v12 = vsel %vm650_vm4, %v3076_v57, 0.0  ;;  %v1857_v42 = vrot.slane %v2661_v5, 2  ;;  %p3150_p3 = por %p3149_p2, %p3148_p1 }
 0x5cf   : > { %1572 = vadd.xlane.f32.xlu1 %v1571_v12  ;;  %p3151_p5 = pnand %p3150_p3, %p3144_p0 }
 0x5d0   : > { %v3078_v58 = vpop.eup %3077 }
 0x5d1   : > { %v1562_v13 = vsel %vm650_vm4, %v3078_v58, 0.0  ;;  %v3080_v17 = vpop.eup %3079 }
 0x5d2   : > { %1563 = vadd.xlane.f32.xlu0 %v1562_v13  ;;  %v1556_v21 = vsel %vm650_vm4, %v3080_v17, 0.0 }
 0x5d4   : > { %v3082_v18 = vpop.eup %3081 }
 0x5d5   : > { %v1565_v23 = vsel %vm650_vm4, %v3082_v18, 0.0 }
 0x5d6   : > { %1557 = vadd.xlane.f32.xlu0 %v1556_v21  ;;  %1566 = vadd.xlane.f32.xlu1 %v1565_v23 }
 0x5d8   : > { %v3084_v33 = vpop.eup %3083 }
 0x5d9   : > { %v1559_v25 = vsel %vm650_vm4, %v3084_v33, 0.0 }
 0x5da   : > { %1560 = vadd.xlane.f32.xlu1 %v1559_v25 }
 0x603   : > { %1700 = vxpose.xlu0.b32.start.end [1/1] (short) (narrow) %v3674_v28, 32 }
 0x607   : > { %1838 = vxpose.xlu1.c.b16.start.end [1/1] (short) (narrow) %v1836_v27, 64 }
 0x60b   : > { %2997 = vset.pattern.permute.xlu1 %v3251_v2 }
 0x64f   : > { %v1576_v29 = vpop.xlane.xlu0 %1575 }
 0x650   : > { %3085 = vrcp.f32 %v1576_v29 }
 0x653   : > { %v1570_v34 = vpop.xlane.xlu0 %1569 }
 0x654   : > { %3087 = vrcp.f32 %v1570_v34  ;;  %v1579_v6 = vpop.xlane.xlu1 %1578 }
 0x655   : > { %3089 = vrcp.f32 %v1579_v6 }
 0x658   : > { %v1573_v35 = vpop.xlane.xlu1 %1572 }
 0x659   : > { %3091 = vrcp.f32 %v1573_v35 }
 0x65b   : > { %v1564_v20 = vpop.xlane.xlu0 %1563 }
 0x65c   : > { %3093 = vrcp.f32 %v1564_v20 }
 0x65d   : > { %v3086_v7 = vpop.eup %3085 }
 0x65e   : > { %v1602_v36 = vmul.f32 %v3086_v7, %v3070_v61 }
 0x65f   : > { %v1558_v37 = vpop.xlane.xlu0 %1557  ;;  %v1567_v38 = vpop.xlane.xlu1 %1566 }
 0x660   : > { %3095 = vrcp.f32 %v1558_v37  ;;  %v2722_v43 = vpack.c.bf16 %v1602_v36, %v1602_v36 }
 0x661   : > { %v3088_v2 = vpop.eup %3087  ;;  %3097 = vrcp.f32 %v1567_v38 }
 0x662   : > { %v3090_v10 = vpop.eup %3089  ;;  %2653 = vst.msk [vmem:[%s3548_s13 + $0x58] sm:$0xf] %vm779_vm5, %v2722_v43  ;;  %v1600_v11 = vmul.f32 %v3088_v2, %v3072_v3 }
 0x663   : > { %v1561_v45 = vpop.xlane.xlu1 %1560  ;;  %v1603_v8 = vmul.f32 %v3090_v10, %v3074_v4 }
 0x664   : > { %3099 = vrcp.f32 %v1561_v45  ;;  %v2720_v46 = vpack.c.bf16 %v1600_v11, %v1600_v11 }
 0x665   : > { %v1607_v15 = vpack.c.bf16 %v1603_v8, %v1602_v36  ;;  %v2723_v47 = vpack.c.bf16 %v1603_v8, %v1603_v8 }
 0x666   : > { %v3092_v30 = vpop.eup %3091  ;;  %2651 = vst.msk [vmem:[%s3548_s13 + $0x50] sm:$0xf] %vm779_vm5, %v2720_v46 }
 0x667   : > { %2654 = vst.msk [vmem:[%s3548_s13 + $0x5c] sm:$0xf] %vm779_vm5, %v2723_v47  ;;  %v1658_v48 = vsel %vm650_vm4, %v1607_v15, 0  ;;  %v1601_v49 = vmul.f32 %v3092_v30, %v3076_v57 }
 0x668   : > { %2876 = vmatpush3.bf16.xpose.msra.mxu1 %v1658_v48 }
 0x669   : > { %v3094_v14 = vpop.eup %3093  ;;  %2877 = vmatprep.subr.bf16.mxu1 %v3249_v0  ;;  %v2721_v50 = vpack.c.bf16 %v1601_v49, %v1601_v49  ;;  %v1606_v39 = vpack.c.bf16 %v1601_v49, %v1600_v11  ;;  %v1846_v9 = vpop.trf.xlu1 }
 0x66a   : > { %v1598_v16 = vmul.f32 %v3094_v14, %v3078_v58  ;;  %v1871_v58 = vsel %vm581_vm2, %v1857_v42, 0 }
 0x66b   : > { %2652 = vst.msk [vmem:[%s3548_s13 + $0x54] sm:$0xf] %vm779_vm5, %v2721_v50  ;;  %v1655_v56 = vsel %vm650_vm4, %v1606_v39, 0 }
 0x66c   : > { %v2718_v52 = vpack.c.bf16 %v1598_v16, %v1598_v16 }
 0x66d   : > { %v3096_v53 = vpop.eup %3095 }
 0x66e   : > { %v3098_v54 = vpop.eup %3097  ;;  %2649 = vst.msk [vmem:[%s3548_s13 + $0x48] sm:$0xf] %vm779_vm5, %v2718_v52  ;;  %v1596_v55 = vmul.f32 %v3096_v53, %v3080_v17  ;;  %v1847_v17 = vpop.trf.xlu1 }
 0x66f   : > { %v1599_v19 = vmul.f32 %v3098_v54, %v3082_v18 }
 0x670   : > { %2878 = vmatpush3.bf16.xpose.msra.mxu1 %v1655_v56  ;;  %v2716_v31 = vpack.c.bf16 %v1596_v55, %v1596_v55 }
 0x671   : > { %v3100_v41 = vpop.eup %3099  ;;  %2879 = vmatprep.subr.bf16.mxu1 %v3249_v0  ;;  %v2719_v59 = vpack.c.bf16 %v1599_v19, %v1599_v19  ;;  %v1605_v60 = vpack.c.bf16 %v1599_v19, %v1598_v16 }
 0x672   : > { %v1597_v44 = vmul.f32 %v3100_v41, %v3084_v33  ;;  %2647 = vst.msk [vmem:[%s3548_s13 + $0x40] sm:$0xf] %vm779_vm5, %v2716_v31  ;;  %v1848_v23 = vpop.trf.xlu1 }
 0x673   : > { %2650 = vst.msk [vmem:[%s3548_s13 + $0x4c] sm:$0xf] %vm779_vm5, %v2719_v59  ;;  %v1652_v63 = vsel %vm650_vm4, %v1605_v60, 0 }
 0x674   : > { %v2717_v61 = vpack.c.bf16 %v1597_v44, %v1597_v44  ;;  %v1604_v40 = vpack.c.bf16 %v1597_v44, %v1596_v55 }
 0x676   : > { %2648 = vst.msk [vmem:[%s3548_s13 + $0x44] sm:$0xf] %vm779_vm5, %v2717_v61  ;;  %v1649_v51 = vsel %vm650_vm4, %v1604_v40, 0  ;;  %v1849_v33 = vpop.trf.xlu1 }
 0x678   : > { %2880 = vmatpush3.bf16.xpose.msra.mxu1 %v1652_v63 }
 0x679   : > { %2881 = vmatprep.subr.bf16.mxu1 %v3249_v0 }
 0x67f   : > { %v1716_v3 = vpop.trf.xlu0 }
 0x680   : > { %2882 = vmatpush3.bf16.xpose.msra.mxu1 %v1649_v51  ;;  %2889 = vmatprep.mubr.msk.f32.mxu0 %vm568_vm3, %v1716_v3 }
 0x683   : > { %v1717_v4 = vpop.trf.xlu0 }
 0x687   : > { %2884 = vmatmul.mubr.msk.bf16.vlgmr.msra.gmra.mxu1 %vm650_vm4, %v3702_v32  ;;  %v1718_v57 = vpop.trf.xlu0 }
 0x68b   : > { %v1719_v62 = vpop.trf.xlu0 }
 0x747   : > { %v1694_v12 = vpop.f32.mrf.mxu1 }
 0x748   : > { %2887 = vmatprep.subr.msk.mxu0 %vm1189_vm6, %v1694_v12 }
 0x749   : > { %v2885_v13 = vpop.f32.mrf.mxu1  ;;  %2888 = vmatpush3.msk.msra.mxu0 %vm1189_vm6, %v1694_v12 }
 0x74a   : > { %2890 = vmatmul.mubr.msk.f32.vlgmr.msra.gmra.mxu0 %vm568_vm3, %v1717_v4  ;;  %2928 = vmatprep.subr.msk.bf16.mxu0 %vm581_vm2, %v1857_v42 }
 0x74b   : > { %v1697_v18 = vpop.f32.mrf.mxu1  ;;  %2892 = vmatprep.mubr.msk.f32.mxu0 %vm568_vm3, %v1718_v57  ;;  %2896 = vmatpush3.bf16.msra.mxu0 %v1871_v58 }
 0x74c   : > { %2905 = vmatprep.subr.bf16.mxu0 %v3249_v0 }
 0x74d   : > { %v2886_v21 = vpop.f32.mrf.mxu1 }
 0x74e   : > { %2893 = vmatmul.mubr.msk.f32.gmra.mxu0 %vm568_vm3, %v1719_v62 }
 0x74f   : > { %2897 = vmatprep.mubr.msk.bf16.mxu0 %vm568_vm3, %v1846_v9 }
 0x752   : > { %2898 = vmatmul.mubr.msk.bf16.vlgmr.msra.gmra.mxu0 %vm568_vm3, %v1847_v17 }
 0x753   : > { %2901 = vmatprep.mubr.msk.bf16.mxu0 %vm568_vm3, %v1848_v23 }
 0x75a   : > { %2902 = vmatmul.mubr.msk.bf16.gmra.mxu0 %vm568_vm3, %v1849_v33 }
 0x75b   : > { %2913 = vmatprep.mubr.msk.bf16.mxu0 %vm3250_vm0, %v3249_v0 }
 0x80a   : > { %v2891_v25 = vpop.f32.mrf.mxu0 }
 0x80b   : > { %v3724_v27 = vadd.f32 %v2891_v25, %v3646_v22 }
 0x80c   : > { %v1813_v29 = vpop.f32.mrf.mxu0 }
 0x80d   : > { %v3727_v34 = vadd.f32 %v1813_v29, %v3648_v24 }
 0x80e   : > { %v2894_v6 = vpop.f32.mrf.mxu0 }
 0x80f   : > { %v3730_v35 = vadd.f32 %v2894_v6, %v3650_v1 }
 0x810   : > { %v1823_v20 = vpop.f32.mrf.mxu0 }
 0x811   : > { %v3733_v7 = vadd.f32 %v1823_v20, %v3652_v26  ;;  %v2135_v20 = vrot.slane %v3674_v28, 4  ;;  %v2291_v28 = vld [vmem:[%s3962_s8 + $0x10] sm:$0xff] }
 0x812   : > { %v2899_v36 = vpop.f32.mrf.mxu0 }
 0x813   : > { %v1944_v8 = vsel %vm650_vm4, %v2899_v36, -inf }
 0x814   : > { %v1907_v37 = vpop.f32.mrf.mxu0 }
 0x815   : > { %v1938_v15 = vsel %vm650_vm4, %v1907_v37, -inf }
 0x816   : > { %v2900_v38 = vpop.f32.mrf.mxu0 }
 0x817   : > { %v1947_v46 = vsel %vm650_vm4, %v2900_v38, -inf }
 0x818   : > { %v1910_v43 = vpop.f32.mrf.mxu0 }
 0x819   : > { %v1941_v47 = vsel %vm650_vm4, %v1910_v43, -inf }
 0x81a   : > { %v2903_v2 = vpop.f32.mrf.mxu0 }
 0x81b   : > { %v1956_v22 = vsel %vm650_vm4, %v2903_v2, -inf }
 0x81c   : > { %1957 = vmax.xlane.f32.xlu0 %v1956_v22  ;;  %v1923_v10 = vpop.f32.mrf.mxu0  ;;  %v2292_v22 = vld [vmem:[%s3962_s8 + $0x18] sm:$0xff] }
 0x81d   : > { %v1950_v1 = vsel %vm650_vm4, %v1923_v10, -inf }
 0x81e   : > { %v2904_v11 = vpop.f32.mrf.mxu0 }
 0x81f   : > { %v1959_v24 = vsel %vm650_vm4, %v2904_v11, -inf }
 0x820   : > { %1960 = vmax.xlane.f32.xlu1 %v1959_v24  ;;  %v1926_v45 = vpop.f32.mrf.mxu0 }
 0x821   : > { %v1953_v26 = vsel %vm650_vm4, %v1926_v45, -inf }
 0x824   : > { %1951 = vmax.xlane.f32.xlu1 %v1950_v1 }
 0x828   : > { %1954 = vmax.xlane.f32.xlu1 %v1953_v26 }
 0x82c   : > { %1945 = vmax.xlane.f32.xlu1 %v1944_v8 }
 0x830   : > { %1948 = vmax.xlane.f32.xlu1 %v1947_v46 }
 0x834   : > { %1939 = vmax.xlane.f32.xlu1 %v1938_v15 }
 0x838   : > { %1942 = vmax.xlane.f32.xlu1 %v1941_v47 }
 0x8a5   : > { %v1958_v30 = vpop.xlane.xlu0 %1957 }
 0x8a6   : > { %v1968_v48 = vsub.f32 %v2903_v2, %v1958_v30  ;;  %v2290_v2 = vld [vmem:[%s3962_s8 + $0x8] sm:$0xff] }
 0x8a8   : > { %v1982_v49 = vmul.f32 1.442695, %v1968_v48 }
 0x8a9   : > { %v1961_v14 = vpop.xlane.xlu1 %1960 }
 0x8aa   : > { %3101 = vpow2.f32 %v1982_v49  ;;  %v1969_v50 = vsub.f32 %v2904_v11, %v1961_v14 }
 0x8ac   : > { %v1984_v16 = vmul.f32 1.442695, %v1969_v50 }
 0x8ad   : > { %v1952_v39 = vpop.xlane.xlu1 %1951 }
 0x8ae   : > { %3103 = vpow2.f32 %v1984_v16  ;;  %v1966_v52 = vsub.f32 %v1923_v10, %v1952_v39  ;;  %v2285_v10 = vld [vmem:[%s3960_s6] sm:$0xff] }
 0x8b0   : > { %v1978_v53 = vmul.f32 1.442695, %v1966_v52 }
 0x8b1   : > { %v1955_v54 = vpop.xlane.xlu1 %1954 }
 0x8b2   : > { %3105 = vpow2.f32 %v1978_v53  ;;  %v1967_v55 = vsub.f32 %v1926_v45, %v1955_v54 }
 0x8b4   : > { %v1980_v56 = vmul.f32 1.442695, %v1967_v55 }
 0x8b5   : > { %v1946_v19 = vpop.xlane.xlu1 %1945 }
 0x8b6   : > { %3107 = vpow2.f32 %v1980_v56  ;;  %v1964_v31 = vsub.f32 %v2899_v36, %v1946_v19  ;;  %v2273_v36 = vld [vmem:[%s3963_s9] sm:$0xff] }
 0x8b7   : > { %v3743_v41 = vpop.eup %3101 }
 0x8b8   : > { %v1974_v59 = vmul.f32 1.442695, %v1964_v31  ;;  %v2004_v44 = vsel %vm650_vm4, %v3743_v41, 0.0 }
 0x8b9   : > { %2005 = vadd.xlane.f32.xlu1 %v2004_v44  ;;  %v1949_v60 = vpop.xlane.xlu1 %1948 }
 0x8ba   : > { %3109 = vpow2.f32 %v1974_v59  ;;  %v1965_v61 = vsub.f32 %v2900_v38, %v1949_v60  ;;  %v2289_v38 = vld [vmem:[%s3962_s8] sm:$0xff] }
 0x8bb   : > { %v3104_v63 = vpop.eup %3103 }
 0x8bc   : > { %v1976_v40 = vmul.f32 1.442695, %v1965_v61  ;;  %v2007_v51 = vsel %vm650_vm4, %v3104_v63, 0.0 }
 0x8bd   : > { %2008 = vadd.xlane.f32.xlu1 %v2007_v51  ;;  %v1940_v3 = vpop.xlane.xlu1 %1939 }
 0x8be   : > { %3111 = vpow2.f32 %v1976_v40  ;;  %v1962_v4 = vsub.f32 %v1907_v37, %v1940_v3  ;;  %v2277_v37 = vadd.f32 1e-05, %v2273_v36 }
 0x8bf   : > { %v3748_v5 = vpop.eup %3105 }
 0x8c0   : > { %v1970_v42 = vmul.f32 1.442695, %v1962_v4  ;;  %v1998_v9 = vsel %vm650_vm4, %v3748_v5, 0.0 }
 0x8c1   : > { %1999 = vadd.xlane.f32.xlu0 %v1998_v9  ;;  %v1943_v57 = vpop.xlane.xlu1 %1942 }
 0x8c2   : > { %3113 = vpow2.f32 %v1970_v42  ;;  %v1963_v12 = vsub.f32 %v1910_v43, %v1943_v57 }
 0x8c3   : > { %v3752_v58 = vpop.eup %3107 }
 0x8c4   : > { %v1972_v13 = vmul.f32 1.442695, %v1963_v12  ;;  %v2001_v17 = vsel %vm650_vm4, %v3752_v58, 0.0 }
 0x8c5   : > { %2002 = vadd.xlane.f32.xlu1 %v2001_v17 }
 0x8c6   : > { %3115 = vpow2.f32 %v1972_v13  ;;  %v2682_v13 = vcombine.low %v3702_v32, %v3702_v32  ;;  %v2286_v32 = vld [vmem:[%s3960_s6 + $0x8] sm:$0xff] }
 0x8c7   : > { %v3756_v18 = vpop.eup %3109  ;;  %3117 = vrsqrt.f32 %v2277_v37 }
 0x8c8   : > { %v1992_v62 = vsel %vm650_vm4, %v3756_v18, 0.0 }
 0x8c9   : > { %1993 = vadd.xlane.f32.xlu0 %v1992_v62  ;;  %v2274_v62 = vld [vmem:[%s3963_s9 + $0x8] sm:$0xff] }
 0x8cb   : > { %v3760_v21 = vpop.eup %3111 }
 0x8cc   : > { %v1995_v23 = vsel %vm650_vm4, %v3760_v21, 0.0 }
 0x8cd   : > { %1996 = vadd.xlane.f32.xlu1 %v1995_v23  ;;  %v2275_v23 = vld [vmem:[%s3963_s9 + $0x10] sm:$0xff] }
 0x8cf   : > { %v3764_v33 = vpop.eup %3113 }
 0x8d0   : > { %v1986_v25 = vsel %vm650_vm4, %v3764_v33, 0.0 }
 0x8d1   : > { %1987 = vadd.xlane.f32.xlu0 %v1986_v25  ;;  %v2287_v25 = vld [vmem:[%s3960_s6 + $0x10] sm:$0xff] }
 0x8d3   : > { %v3768_v29 = vpop.eup %3115 }
 0x8d4   : > { %v1989_v6 = vsel %vm650_vm4, %v3768_v29, 0.0  ;;  %v3118_v43 = vpop.eup %3117 }
 0x8d5   : > { %1990 = vadd.xlane.f32.xlu1 %v1989_v6 }
 0x8e6   : > { %2295 = vperm.xlu1 %2997, %v2289_v38  }
 0x8ea   : > { %2300 = vperm.xlu1 %2997, %v2290_v2   ;;  %v2366_v2 = vld [vmem:[%s3961_s7 + $0x8] sm:$0xff] }
 0x8ee   : > { %2305 = vperm.xlu1 %2997, %v2291_v28   ;;  %v2367_v28 = vld [vmem:[%s3961_s7 + $0x10] sm:$0xff] }
 0x8f2   : > { %2310 = vperm.xlu1 %2997, %v2292_v22   ;;  %v2368_v22 = vld [vmem:[%s3961_s7 + $0x18] sm:$0xff] }
 0x8f6   : > { %2319 = vperm.xlu1 %2997, %v2285_v10  }
 0x8fa   : > { %2324 = vperm.xlu1 %2997, %v2286_v32  }
 0x8fe   : > { %2137 = vxpose.xlu0.b32.start.end [1/1] (short) (narrow) %v2135_v20, 32  ;;  %2329 = vperm.xlu1 %2997, %v2287_v25   ;;  %v2288_v20 = vld [vmem:[%s3960_s6 + $0x18] sm:$0xff] }
 0x902   : > { %2334 = vperm.xlu1 %2997, %v2288_v20  }
 0x933   : > { %2343 = vperm.xlu0 %2996, %v3118_v43   ;;  %v2365_v43 = vld [vmem:[%s3961_s7] sm:$0xff] }
 0x942   : > { %v2006_v11 = vpop.xlane.xlu1 %2005 }
 0x943   : > { %3119 = vrcp.f32 %v2006_v11 }
 0x946   : > { %v2009_v24 = vpop.xlane.xlu1 %2008 }
 0x947   : > { %3121 = vrcp.f32 %v2009_v24 }
 0x94a   : > { %v2000_v1 = vpop.xlane.xlu0 %1999 }
 0x94b   : > { %3123 = vrcp.f32 %v2000_v1 }
 0x94e   : > { %v2003_v45 = vpop.xlane.xlu1 %2002 }
 0x94f   : > { %3125 = vrcp.f32 %v2003_v45 }
 0x950   : > { %v3120_v26 = vpop.eup %3119 }
 0x951   : > { %v2032_v8 = vmul.f32 %v3120_v26, %v3743_v41 }
 0x952   : > { %v1994_v46 = vpop.xlane.xlu0 %1993 }
 0x953   : > { %3127 = vrcp.f32 %v1994_v46  ;;  %v2730_v15 = vpack.c.bf16 %v2032_v8, %v2032_v8 }
 0x954   : > { %v3122_v47 = vpop.eup %3121 }
 0x955   : > { %v2033_v30 = vmul.f32 %v3122_v47, %v3104_v63  ;;  %2680 = vst.msk [vmem:[%s3548_s13 + $0x78] sm:$0xf] %vm779_vm5, %v2730_v15 }
 0x956   : > { %v1997_v48 = vpop.xlane.xlu1 %1996 }
 0x957   : > { %3129 = vrcp.f32 %v1997_v48  ;;  %v2037_v49 = vpack.c.bf16 %v2033_v30, %v2032_v8  ;;  %v2731_v14 = vpack.c.bf16 %v2033_v30, %v2033_v30 }
 0x958   : > { %v3124_v50 = vpop.eup %3123 }
 0x959   : > { %2681 = vst.msk [vmem:[%s3548_s13 + $0x7c] sm:$0xf] %vm779_vm5, %v2731_v14  ;;  %v2092_v16 = vsel %vm650_vm4, %v2037_v49, 0  ;;  %v2030_v39 = vmul.f32 %v3124_v50, %v3748_v5 }
 0x95a   : > { %v1988_v52 = vpop.xlane.xlu0 %1987  ;;  %2906 = vmatpush3.bf16.xpose.msra.mxu0 %v2092_v16 }
 0x95b   : > { %3131 = vrcp.f32 %v1988_v52  ;;  %2907 = vmatprep.subr.bf16.mxu0 %v3249_v0  ;;  %v2728_v53 = vpack.c.bf16 %v2030_v39, %v2030_v39 }
 0x95c   : > { %v3126_v54 = vpop.eup %3125 }
 0x95d   : > { %v2031_v55 = vmul.f32 %v3126_v54, %v3752_v58  ;;  %2678 = vst.msk [vmem:[%s3548_s13 + $0x70] sm:$0xf] %vm779_vm5, %v2728_v53 }
 0x95e   : > { %v1991_v56 = vpop.xlane.xlu1 %1990 }
 0x95f   : > { %3133 = vrcp.f32 %v1991_v56  ;;  %v2036_v19 = vpack.c.bf16 %v2031_v55, %v2030_v39  ;;  %v2729_v31 = vpack.c.bf16 %v2031_v55, %v2031_v55 }
 0x960   : > { %v3128_v41 = vpop.eup %3127 }
 0x961   : > { %2679 = vst.msk [vmem:[%s3548_s13 + $0x74] sm:$0xf] %vm779_vm5, %v2729_v31  ;;  %v2089_v59 = vsel %vm650_vm4, %v2036_v19, 0  ;;  %v2028_v44 = vmul.f32 %v3128_v41, %v3756_v18  ;;  %v2078_v18 = vrot.slane %v2682_v13, 2 }
 0x962   : > { %2908 = vmatpush3.bf16.xpose.msra.mxu0 %v2089_v59 }
 0x963   : > { %2909 = vmatprep.subr.bf16.mxu0 %v3249_v0  ;;  %v2726_v60 = vpack.c.bf16 %v2028_v44, %v2028_v44 }
 0x964   : > { %v3130_v61 = vpop.eup %3129 }
 0x965   : > { %v2029_v63 = vmul.f32 %v3130_v61, %v3760_v21  ;;  %2676 = vst.msk [vmem:[%s3548_s13 + $0x68] sm:$0xf] %vm779_vm5, %v2726_v60  ;;  %v2278_v21 = vadd.f32 1e-05, %v2274_v62 }
 0x967   : > { %v2035_v40 = vpack.c.bf16 %v2029_v63, %v2028_v44  ;;  %v2727_v51 = vpack.c.bf16 %v2029_v63, %v2029_v63  ;;  %3135 = vrsqrt.f32 %v2278_v21 }
 0x968   : > { %v3132_v3 = vpop.eup %3131 }
 0x969   : > { %2677 = vst.msk [vmem:[%s3548_s13 + $0x6c] sm:$0xf] %vm779_vm5, %v2727_v51  ;;  %v2086_v4 = vsel %vm650_vm4, %v2035_v40, 0  ;;  %v2026_v5 = vmul.f32 %v3132_v3, %v3764_v33  ;;  %v2279_v33 = vadd.f32 1e-05, %v2275_v23 }
 0x96a   : > { %2910 = vmatpush3.bf16.xpose.msra.mxu0 %v2086_v4 }
 0x96b   : > { %2911 = vmatprep.subr.bf16.mxu0 %v3249_v0  ;;  %v2724_v42 = vpack.c.bf16 %v2026_v5, %v2026_v5  ;;  %3137 = vrsqrt.f32 %v2279_v33 }
 0x96c   : > { %v3134_v9 = vpop.eup %3133 }
 0x96d   : > { %v2027_v57 = vmul.f32 %v3134_v9, %v3768_v29  ;;  %2674 = vst.msk [vmem:[%s3548_s13 + $0x60] sm:$0xf] %vm779_vm5, %v2724_v42  ;;  %v2276_v29 = vld [vmem:[%s3963_s9 + $0x18] sm:$0xff] }
 0x96e   : > { %v2280_v6 = vadd.f32 1e-05, %v2276_v29 }
 0x96f   : > { %v2034_v12 = vpack.c.bf16 %v2027_v57, %v2026_v5  ;;  %v2725_v58 = vpack.c.bf16 %v2027_v57, %v2027_v57 }
 0x970   : > { %3139 = vrsqrt.f32 %v2280_v6 }
 0x971   : > { %2675 = vst.msk [vmem:[%s3548_s13 + $0x64] sm:$0xf] %vm779_vm5, %v2725_v58  ;;  %v2083_v17 = vsel %vm650_vm4, %v2034_v12, 0 }
 0x972   : > { %2912 = vmatpush3.bf16.xpose.msra.mxu0 %v2083_v17 }
 0x974   : > { %v3136_v36 = vpop.eup %3135 }
 0x975   : > { %2348 = vperm.xlu1 %2997, %v3136_v36  }
 0x978   : > { %v3138_v37 = vpop.eup %3137 }
 0x979   : > { %2914 = vmatmul.mubr.msk.bf16.vlgmr.msra.gmra.mxu0 %vm650_vm4, %v2078_v18  ;;  %2353 = vperm.xlu1 %2997, %v3138_v37  }
 0x97a   : > { %v2153_v0 = vpop.trf.xlu0 }
 0x97b   : > { %2919 = vmatprep.mubr.msk.f32.mxu1 %vm568_vm3, %v2153_v0 }
 0x97d   : > { %v3140_v38 = vpop.eup %3139 }
 0x97e   : > { %2358 = vperm.xlu1 %2997, %v3140_v38   ;;  %v2154_v10 = vpop.trf.xlu0 }
 0x982   : > { %2371 = vperm.xlu1 %2997, %v2365_v43   ;;  %v2155_v11 = vpop.trf.xlu0 }
 0x986   : > { %2376 = vperm.xlu1 %2997, %v2366_v2   ;;  %v2156_v26 = vpop.trf.xlu0 }
 0x98a   : > { %2381 = vperm.xlu1 %2997, %v2367_v28  }
 0x98e   : > { %2386 = vperm.xlu1 %2997, %v2368_v22  }
 0xa39   : > { %v2128_v24 = vpop.f32.mrf.mxu0 }
 0xa3a   : > { %2917 = vmatprep.subr.msk.mxu1 %vm1189_vm6, %v2128_v24 }
 0xa3b   : > { %v2915_v1 = vpop.f32.mrf.mxu0  ;;  %2918 = vmatpush3.msk.msra.mxu1 %vm1189_vm6, %v2128_v24 }
 0xa3c   : > { %2920 = vmatmul.mubr.msk.f32.vlgmr.msra.gmra.mxu1 %vm568_vm3, %v2154_v10 }
 0xa3d   : > { %v2131_v45 = vpop.f32.mrf.mxu0  ;;  %2922 = vmatprep.mubr.msk.f32.mxu1 %vm568_vm3, %v2155_v11 }
 0xa3f   : > { %v2916_v8 = vpop.f32.mrf.mxu0 }
 0xa40   : > { %2923 = vmatmul.mubr.msk.f32.gmra.mxu1 %vm568_vm3, %v2156_v26 }
 0xa41   : > { %3154 = shalt.err (!%p3151_p5)
}
 0xa42   : > { %s3155_s13 = scalar_lea.hbm %s3864_s0, 2048  ;;  %s3159_s24 = scalar_lea.hbm %s3965_s11, 4096 }
 0xa43   : > { %p3156_p6 = scmp.ne.s32.totalorder %s3864_s0, %s3155_s13  ;;  %p3160_p10 = scmp.lt.s32.totalorder %s3864_s0, %s3965_s11 }
 0xa44   : > { %p3161_p11 = scmp.lt.s32.totalorder %s3159_s24, %s3155_s13 }
 0xa45   : > { %p3157_p7 = pnand %p3156_p6, %p3358_p4 }
 0xa46   : > { %p3162_p12 = por %p3161_p11, %p3160_p10 }
 0xa47   : > { %p3158_p9 = pneg %p3157_p7 }
 0xa49   : > { %p3163_p13 = pnand %p3162_p12, %p3158_p9 }
 0xa4b   : > { %3166 = shalt.err (!%p3163_p13)
}
 0xa4c   : > { %s3253_s1 = smov 64   ;;  %s3254_s16 = smov 4   ;;  %v2296_v46 = vpop.permute.xlu1 %2295  ;;  %v2344_v42 = vpop.permute.xlu0 %2343 }
 0xa4d   : > { %s3974_s15 = scalar_lea.sflag [#allocation5], %s3543_s28  ;;  %s2732_s12 = sshll.u32 %s3239_s20, 9 }
 0xa4e   : > { %2930 = dma.vmem_to_hbm [thread:$0]  (%p3358_p4), %s3867_s26, 2048, %s3864_s0, %s3974_s15, %s3253_s1, %s3253_s1, %s3254_s16  }
 0xa4f   : > { %s2577_s0 = sshll.u32 %s3543_s28, 5  ;;  %s3903_s24 = scalar_lea.hbm %s3964_s10, %s2732_s12 }
 0xa50   : > { %v2301_v15 = vpop.permute.xlu1 %2300  ;;  %s437_s26 = scalar_lea.vmem [#allocation2], %s2577_s0  ;;  %s2398_s20 = scalar_lea.sflag [#allocation3], %s3543_s28 }
 0xa51   : > { %s2417_s13 = sshll.u32 %s437_s26, 4  ;;  %s3255_s1 = smov [#allocation2]   ;;  %s3905_s13 = int_to_ptr.vmem [resolvable:$true] %s2417_s13 }
 0xa52   : > { %s3167_s23 = scalar_lea.vmem %s3905_s13, 512  ;;  %s3171_s16 = sshll.u32 %s3255_s1, 4  ;;  %s3172_s16 = int_to_ptr.vmem [resolvable:$false] %s3171_s16 }
 0xa53   : > { %p3168_p0 = scmp.ne.s32.totalorder %s3905_s13, %s3167_s23  ;;  %s3173_s15 = scalar_lea.vmem %s3172_s16, 1024 }
 0xa54   : > { %v2306_v47 = vpop.permute.xlu1 %2305  ;;  %p3174_p3 = scmp.lt.s32.totalorder %s3905_s13, %s3172_s16  ;;  %p3175_p5 = scmp.lt.s32.totalorder %s3173_s15, %s3167_s23 }
 0xa55   : > { %p3169_p1 = pnand %p3168_p0, %p3358_p4 }
 0xa56   : > { %p3176_p6 = por %p3175_p5, %p3174_p3 }
 0xa57   : > { %p3170_p2 = pneg %p3169_p1 }
 0xa58   : > { %v2311_v30 = vpop.permute.xlu1 %2310 }
 0xa59   : > { %p3177_p7 = pnand %p3176_p6, %p3170_p2 }
 0xa5c   : > { %v2320_v48 = vpop.permute.xlu1 %2319 }
 0xa60   : > { %v2325_v49 = vpop.permute.xlu1 %2324 }
 0xa64   : > { %v2330_v14 = vpop.permute.xlu1 %2329 }
 0xa68   : > { %v2335_v50 = vpop.permute.xlu1 %2334 }
 0xa6c   : > { %v2349_v16 = vpop.permute.xlu1 %2348 }
 0xa70   : > { %v2354_v39 = vpop.permute.xlu1 %2353 }
 0xa74   : > { %v2359_v52 = vpop.permute.xlu1 %2358 }
 0xa78   : > { %v2372_v53 = vpop.permute.xlu1 %2371 }
 0xa7c   : > { %v2377_v54 = vpop.permute.xlu1 %2376 }
 0xa80   : > { %v2382_v63 = vpop.permute.xlu1 %2381 }
 0xa84   : > { %v2387_v13 = vpop.permute.xlu1 %2386 }
 0xafc   : > { %v2921_v55 = vpop.f32.mrf.mxu1 }
 0xafd   : > { %v2270_v56 = vadd.f32 %v2921_v55, %v3724_v27 }
 0xafe   : > { %v2250_v19 = vpop.f32.mrf.mxu1 }
 0xaff   : > { %v2314_v31 = vsub.f32 %v2270_v56, %v2301_v15  ;;  %v2269_v41 = vadd.f32 %v2250_v19, %v3727_v34 }
 0xb00   : > { %v2924_v59 = vpop.f32.mrf.mxu1 }
 0xb01   : > { %v2338_v44 = vmul.f32 %v2325_v49, %v2314_v31  ;;  %v2313_v60 = vsub.f32 %v2269_v41, %v2296_v46  ;;  %v2272_v61 = vadd.f32 %v2924_v59, %v3730_v35 }
 0xb02   : > { %v2260_v40 = vpop.f32.mrf.mxu1 }
 0xb03   : > { %v2362_v51 = vmul.f32 %v2349_v16, %v2338_v44  ;;  %v2337_v3 = vmul.f32 %v2320_v48, %v2313_v60  ;;  %v2316_v4 = vsub.f32 %v2272_v61, %v2311_v30  ;;  %v2271_v5 = vadd.f32 %v2260_v40, %v3733_v7 }
 0xb05   : > { %v2390_v27 = vadd.f32 %v2377_v54, %v2362_v51  ;;  %v2361_v9 = vmul.f32 %v2344_v42, %v2337_v3  ;;  %v2340_v57 = vmul.f32 %v2335_v50, %v2316_v4  ;;  %v2315_v12 = vsub.f32 %v2271_v5, %v2306_v47 }
 0xb07   : > { %2394 = vst.msk [vmem:[%s437_s26 + $0x8] sm:$0xff] %vm650_vm4, %v2390_v27  ;;  %v2389_v34 = vadd.f32 %v2372_v53, %v2361_v9  ;;  %v2364_v58 = vmul.f32 %v2359_v52, %v2340_v57  ;;  %v2339_v35 = vmul.f32 %v2330_v14, %v2315_v12 }
 0xb09   : > { %2393 = vst.msk [vmem:[%s437_s26] sm:$0xff] %vm650_vm4, %v2389_v34  ;;  %v2392_v17 = vadd.f32 %v2387_v13, %v2364_v58  ;;  %v2363_v7 = vmul.f32 %v2354_v39, %v2339_v35 }
 0xb0b   : > { %2396 = vst.msk [vmem:[%s437_s26 + $0x18] sm:$0xff] %vm650_vm4, %v2392_v17  ;;  %v2391_v18 = vadd.f32 %v2382_v63, %v2363_v7 }
 0xb0d   : > { %2395 = vst.msk [vmem:[%s437_s26 + $0x10] sm:$0xff] %vm650_vm4, %v2391_v18 }
 0xb0e   : > { %3180 = shalt.err (!%p3177_p7)
}
 0xb0f   : > { %s3181_s0 = scalar_lea.hbm %s3903_s24, 512  ;;  %s3185_s25 = scalar_lea.hbm %s3964_s10, 1024 }
 0xb10   : > { %p3182_p9 = scmp.ne.s32.totalorder %s3903_s24, %s3181_s0  ;;  %p3186_p12 = scmp.lt.s32.totalorder %s3903_s24, %s3964_s10 }
 0xb11   : > { %p3187_p13 = scmp.lt.s32.totalorder %s3185_s25, %s3181_s0 }
 0xb12   : > { %p3183_p10 = pnand %p3182_p9, %p3358_p4 }
 0xb13   : > { %p3188_p0 = por %p3187_p13, %p3186_p12 }
 0xb14   : > { %p3184_p11 = pneg %p3183_p10 }
 0xb16   : > { %p3189_p1 = pnand %p3188_p0, %p3184_p11 }
 0xb18   : > { %3192 = shalt.err (!%p3189_p1)
}
 0xb19   : > { %s3256_s23 = smov 128   ;;  %s3257_s16 = smov 8  }
 0xb1a   : > { %2929 = dma.vmem_to_hbm [thread:$0]  (%p3358_p4), %s3905_s13, 512, %s3903_s24, %s2398_s20, %s3256_s23, %s3256_s23, %s3257_s16  }
 0xb1b PF: > { %p2940_p2 = scmp.ge.s32.totalorder %s3247_s22, 2  ;;  %s2450_s15 = sand.u32 1, %s3227_s17  }
 0xb1c   : > { %s2451_s0 = scalar_lea.sflag [#allocation3], %s2450_s15 }
 0xb1d   : > { %p2934_p3 = pnand %p2940_p2, %p3365_p8 }
 0xb1f   : > { %p2935_p5 = pneg %p2934_p3 }
 0xb21   : > { %3218 = dma.done.wait (%p2935_p5), %s2451_s0, 512  }
 0xb22   : > { %3220 = vsyncadd (%p2935_p5), %s2451_s0, 4294966784  ;;  %s2460_s26 = scalar_lea.sflag [#allocation5], %s2450_s15 }
 0xb23   : > { %3222 = dma.done.wait (%p2935_p5), %s2460_s26, 2048  }
 0xb24   : > { %3224 = vsyncadd (%p2935_p5), %s2460_s26, 4294965248  ;;  %s28_s22 = sadd.s32 1, %s3247_s22   ;;  %s3975_s27 = sld [smem:[#allocation8_spill]] }
 0xb25   : > { %p25_p6 = scmp.ge.s32.totalorder %s28_s22, 4   ;;  %s3976_s17 = smov %s3231_s18 }
 0xb26   : > { %s3977_s18 = smov %s3235_s19  ;;  %s3978_s19 = smov %s3371_s30 }
 0xb27   : > { %s3979_s20 = smov %s3243_s21  ;;  %27 = sbr.rel (!%p25_p6) target bundleno = 9 (0x9), region = 121 }
 0xb2a   : > { %s3980_s21 = smov %s3975_s27 }
 0xb2c   :  { %2465 = vsyncpa [#allocation3], 1 }
 0xb2d   :  { %2467 = vsyncpa [#allocation3 + $0x1], 1 }
 0xb2e   :  { %2468 = vsyncpa [#allocation5], 1 }
 0xb2f   :  { %2470 = vsyncpa [#allocation5 + $0x1], 1 }

</bundles_post_ra>
